<compile_context>
chip_gen: v5e
topology: v5e:2x2
jax: 0.10.0
libtpu: 0.0.40
codegen_flags: <defaults>
</compile_context>

<pallas_src>
import numpy as np
import jax
import jax.numpy as jnp
from jax.experimental import pallas as pl
from jax.experimental.pallas import tpu as pltpu


# ----------------------------- fused Pallas kernel ------------------------------
# pk64  (352, 64):  rows   0..143 = G gather matrix (row t*16+p -> conv1 pos (2*(p//3)+t//3, 2*(p%3)+t%3))
#                   rows 144..191 = conv1 weight (48,16), K order (i,j,cin) over zero-padded 4x4 window
#                   row  192      = conv1 bias (lanes 0..15)
#                   rows 200..343 = conv2 weight, row t*16+cin, lanes 0..31 = cout
#                   row  344      = conv2 bias (lanes 0..31)
# pk256 (304, 256): rows   0..287 = fc1 weight, row p*32+c = wf1[:, c*9+p] (torch flatten folded in)
#                   row  288      = fc1 bias
#                   rows 296..297 = fc2 weight (2, 256)
#                   row  298      = fc2 bias in lanes 0..1

def fused_actor_kernel(p1_ref, u_ref, pk64_ref, pk256_ref, o_ref):
    f32 = jnp.float32

    # ---- conv1 + ReLU: (64, 48) @ (48, 16) + b1 ----
    w1 = pk64_ref[144:192, 0:16]                                    # (48, 16)
    b1 = pk64_ref[192:193, 0:16]                                    # (1, 16)
    h1 = jnp.dot(p1_ref[0], w1, preferred_element_type=f32) + b1
    h1 = jnp.maximum(h1, 0.0)                                       # (64, 16)

    # ---- gather conv1 rows into conv2 im2col order (single MXU push, batch-independent) ----
    h1g = jnp.dot(pk64_ref[0:144, :], h1, preferred_element_type=f32)   # (144, 16), rows t*16+p

    # ---- conv2 + ReLU: 9 taps, 3 independent accumulators (MRF pipelining on v5e/v6e) ----
    b2 = pk64_ref[344:345, 0:32]                                    # (1, 32)
    acc2 = [jnp.zeros((16, 32), f32) for _ in range(3)]
    for t in range(9):
        blk = h1g[t * 16:(t + 1) * 16, :]                           # (16, 16), 8-aligned slice
        w2t = pk64_ref[200 + t * 16:200 + (t + 1) * 16, 0:32]       # (16, 32)
        acc2[t % 3] = acc2[t % 3] + jnp.dot(blk, w2t, preferred_element_type=f32)
    h2 = jnp.maximum(acc2[0] + acc2[1] + acc2[2] + b2, 0.0)         # (16, 32); rows 0..8 valid

    # ---- fc1 + ReLU: torch channel-major flatten folded into per-position weight blocks ----
    acc3 = [jnp.zeros((1, 256), f32) for _ in range(3)]
    for p in range(9):
        wp = pk256_ref[p * 32:(p + 1) * 32, :]                      # (32, 256)
        acc3[p % 3] = acc3[p % 3] + jnp.dot(h2[p:p + 1, :], wp, preferred_element_type=f32)
    bf1 = pk256_ref[288:289, :]                                     # (1, 256)
    h3 = jnp.maximum(acc3[0] + acc3[1] + acc3[2] + bf1, 0.0)        # (1, 256)

    # ---- fc2 + GumbelSoftmax (tau = 1.0, soft output) ----
    tail = pk256_ref[296:304, :]                                    # rows 0-1 = W_fc2, row 2 lanes 0-1 = b_fc2
    logits = jnp.dot(h3, tail[0:2, :].T, preferred_element_type=f32) + tail[2:3, 0:2]   # (1, 2)
    eps = 1e-20
    gum = -jnp.log(-jnp.log(u_ref[0] + eps) + eps)                  # gumbel from uniform
    z = logits + gum
    z = z - jnp.max(z, axis=-1, keepdims=True)
    e = jnp.exp(z)
    o_ref[0] = e / jnp.sum(e, axis=-1, keepdims=True)               # exact normalization
    # TODO(synk): hard (straight-through one-hot) Gumbel-Softmax variant not implemented
    # (GumbelSoftmax definition not shown in the spec; soft tau=1 path implemented).


def _actor_fwd(x_ncdhw, params, u):
    B = x_ncdhw.shape[0]
    pk64, pk256 = params
    # NCDHW (B,3,1,32,32): drop depth, carve non-overlapping 4x4 stride blocks
    # (conv1 kernel 3 <= stride 4) and flatten each to a 48-wide (i, j, cin) patch row.
    xb = x_ncdhw[:, :, 0].reshape(B, 3, 8, 4, 8, 4)                 # [b, cin, oh, i, ow, j]
    p1 = jnp.transpose(xb, (0, 2, 4, 3, 5, 1)).reshape(B, 64, 48)   # [b, (oh,ow), (i,j,cin)]
    u3 = u.reshape(B, 1, 2)
    out = pl.pallas_call(
        fused_actor_kernel,
        out_shape=jax.ShapeDtypeStruct((B, 1, 2), jnp.float32),
        grid=(B,),
        in_specs=[
            pl.BlockSpec((1, 64, 48), lambda b: (b, 0, 0)),   # per-batch patches
            pl.BlockSpec((1, 1, 2), lambda b: (b, 0, 0)),     # per-batch uniform noise
            pl.BlockSpec((352, 64), lambda b: (0, 0)),        # packed conv weights + gather
            pl.BlockSpec((304, 256), lambda b: (0, 0)),       # packed fc weights
        ],
        out_specs=pl.BlockSpec((1, 1, 2), lambda b: (b, 0, 0)),
        compiler_params=pltpu.CompilerParams(
            dimension_semantics=("parallel",)),
    )(p1, u3, pk64, pk256)
    return out.reshape(B, 2)


multi_agent_cnn_actor = jax.jit(_actor_fwd)


# ----------------------- one-time weight preparation (host) ----------------------

def prepare_params(w1, b1, w2, b2, wf1, bf1, wf2, bf2):
    """PyTorch-layout params -> two packed, matmul-ready VMEM buffers (batch-independent)."""
    w1 = np.asarray(w1, np.float32); b1 = np.asarray(b1, np.float32)
    w2 = np.asarray(w2, np.float32); b2 = np.asarray(b2, np.float32)
    wf1 = np.asarray(wf1, np.float32); bf1 = np.asarray(bf1, np.float32)
    wf2 = np.asarray(wf2, np.float32); bf2 = np.asarray(bf2, np.float32)

    pk64 = np.zeros((352, 64), np.float32)
    # Gather matrix: row t*16 + p picks conv1-output position (2*oh2 + i, 2*ow2 + j).
    for t in range(9):
        i, j = t // 3, t % 3
        for p in range(9):
            oh2, ow2 = p // 3, p % 3
            pk64[t * 16 + p, (2 * oh2 + i) * 8 + (2 * ow2 + j)] = 1.0
    # conv1 weight -> (48, 16); K order (i, j, cin) over a zero-padded 4x4 window.
    w1p = np.zeros((4, 4, 3, 16), np.float32)
    w1p[:3, :3] = np.transpose(w1[:, :, 0], (2, 3, 1, 0))           # (kh, kw, cin, cout)
    pk64[144:192, 0:16] = w1p.reshape(48, 16)
    pk64[192, 0:16] = b1
    # conv2 weight: row t*16 + cin, cols cout.
    w2t = np.transpose(w2[:, :, 0], (2, 3, 1, 0)).reshape(9, 16, 32)
    pk64[200:344, 0:32] = w2t.reshape(144, 32)
    pk64[344, 0:32] = b2

    pk256 = np.zeros((304, 256), np.float32)
    # fc1 weight with torch's channel-major flatten (feat idx = c*9 + p) folded in:
    # row p*32 + c, cols n  =  wf1[n, c*9 + p].
    wf1p = np.transpose(wf1.reshape(256, 32, 9), (2, 1, 0))         # (9, 32, 256)
    pk256[0:288, :] = wf1p.reshape(288, 256)
    pk256[288, :] = bf1
    pk256[296:298, :] = wf2                                         # (2, 256)
    pk256[298, 0:2] = bf2

    return jnp.asarray(pk64), jnp.asarray(pk256)


# --------------------------- pure-JAX reference (check) --------------------------

def reference_forward(x, w1, b1, w2, b2, wf1, bf1, wf2, bf2, u):
    xs = x[:, :, 0]                                                 # (B, 3, 32, 32)
    y1 = jax.lax.conv_general_dilated(xs, w1[:, :, 0], (4, 4), 'VALID',
                                      dimension_numbers=('NCHW', 'OIHW', 'NCHW'))
    h1 = jnp.maximum(y1 + b1[None, :, None, None], 0.0)
    y2 = jax.lax.conv_general_dilated(h1, w2[:, :, 0], (2, 2), 'VALID',
                                      dimension_numbers=('NCHW', 'OIHW', 'NCHW'))
    h2 = jnp.maximum(y2 + b2[None, :, None, None], 0.0)
    feat = h2.reshape(h2.shape[0], -1)                              # channel-major (torch view)
    h3 = jnp.maximum(feat @ wf1.T + bf1, 0.0)
    logits = h3 @ wf2.T + bf2
    gum = -jnp.log(-jnp.log(u + 1e-20) + 1e-20)
    z = logits + gum
    z = z - jnp.max(z, axis=-1, keepdims=True)
    e = jnp.exp(z)
    return e / jnp.sum(e, axis=-1, keepdims=True)


# -------------------------------------- main --------------------------------------

if __name__ == "__main__":
    key = jax.random.PRNGKey(0)
    ks = jax.random.split(key, 10)
    B = 2

    # Input matching the module's implied shape: (B, 3, 1, 32, 32) NCDHW.
    x = jax.random.normal(ks[0], (B, 3, 1, 32, 32), jnp.float32)

    # Deterministic parameter init at PyTorch layouts (synthetic; not a checkpoint).
    w1 = 0.10 * jax.random.normal(ks[1], (16, 3, 1, 3, 3), jnp.float32)
    b1 = 0.10 * jax.random.normal(ks[2], (16,), jnp.float32)
    w2 = 0.10 * jax.random.normal(ks[3], (32, 16, 1, 3, 3), jnp.float32)
    b2 = 0.10 * jax.random.normal(ks[4], (32,), jnp.float32)
    wf1 = 0.05 * jax.random.normal(ks[5], (256, 288), jnp.float32)
    bf1 = 0.05 * jax.random.normal(ks[6], (256,), jnp.float32)
    wf2 = 0.05 * jax.random.normal(ks[7], (2, 256), jnp.float32)
    bf2 = 0.05 * jax.random.normal(ks[8], (2,), jnp.float32)

    # Uniform noise for GumbelSoftmax (torch.rand_like equivalent), gumbel-ized in-kernel.
    u = jax.random.uniform(ks[9], (B, 2), jnp.float32)

    params = prepare_params(w1, b1, w2, b2, wf1, bf1, wf2, bf2)
    out = multi_agent_cnn_actor(x, params, u)
    jax.block_until_ready(out)

    assert out.shape == (B, 2)
    ref = reference_forward(x, w1, b1, w2, b2, wf1, bf1, wf2, bf2, u)
    # tolerance covers MXU f32 matmul pass/accumulation-order differences vs lax.conv
    assert bool(jnp.max(jnp.abs(out - ref)) < 2e-2)
    # normalization is now an exact divide
    assert bool(jnp.max(jnp.abs(jnp.sum(out, axis=-1) - 1.0)) < 1e-5)
    print("KERNEL_OK")
</pallas_src>

<mosaic_0001>
module attributes {stable_mosaic.version = 11 : i64} {
  func.func @fused_actor_kernel(%arg0: i32, %arg1: memref<1x64x48xf32, #tpu.memory_space<vmem>>, %arg2: memref<1x1x2xf32, #tpu.memory_space<vmem>>, %arg3: memref<352x64xf32, #tpu.memory_space<vmem>>, %arg4: memref<304x256xf32, #tpu.memory_space<vmem>>, %arg5: memref<1x1x2xf32, #tpu.memory_space<vmem>>) attributes {dimension_semantics = [#tpu.dimension_semantics<parallel>], iteration_bounds = array<i64: 2>, scalar_prefetch = 0 : i64, scratch_operands = 0 : i64, tpu.core_type = #tpu.core_type<tc>, window_params = [{transform_indices = @transform_0, window_bounds = array<i64: 1, 64, 48>}, {transform_indices = @transform_1, window_bounds = array<i64: 1, 1, 2>}, {pipeline_mode = #tpu.pipeline_mode<synchronous>, transform_indices = @transform_2, window_bounds = array<i64: 352, 64>}, {pipeline_mode = #tpu.pipeline_mode<synchronous>, transform_indices = @transform_3, window_bounds = array<i64: 304, 256>}, {transform_indices = @transform_4, window_bounds = array<i64: 1, 1, 2>}]} {
    %c144 = arith.constant 144 : index
    %c0 = arith.constant 0 : index
    %0 = vector.load %arg3[%c144, %c0] : memref<352x64xf32, #tpu.memory_space<vmem>>, vector<48x16xf32>
    %c192 = arith.constant 192 : index
    %c0_0 = arith.constant 0 : index
    %1 = vector.load %arg3[%c192, %c0_0] : memref<352x64xf32, #tpu.memory_space<vmem>>, vector<1x16xf32>
    %c0_1 = arith.constant 0 : index
    %c0_2 = arith.constant 0 : index
    %c0_3 = arith.constant 0 : index
    %2 = vector.load %arg1[%c0_1, %c0_2, %c0_3] : memref<1x64x48xf32, #tpu.memory_space<vmem>>, vector<1x64x48xf32>
    %3 = vector.shape_cast %2 : vector<1x64x48xf32> to vector<64x48xf32>
    %cst = arith.constant dense<0.000000e+00> : vector<64x16xf32>
    %4 = tpu.matmul %3, %0, %cst {dimension_numbers = #tpu.dot_dimension_numbers<[1], [0], [0], [1], [0, 0, 1, 1], [], []>} : vector<64x48xf32>, vector<48x16xf32>, vector<64x16xf32> -> vector<64x16xf32>
    %5 = vector.broadcast %1 : vector<1x16xf32> to vector<64x16xf32>
    %6 = arith.addf %4, %5 : vector<64x16xf32>
    %cst_4 = arith.constant 0.000000e+00 : f32
    %7 = vector.broadcast %cst_4 : f32 to vector<64x16xf32>
    %8 = arith.maximumf %6, %7 : vector<64x16xf32>
    %c0_5 = arith.constant 0 : index
    %c0_6 = arith.constant 0 : index
    %9 = vector.load %arg3[%c0_5, %c0_6] : memref<352x64xf32, #tpu.memory_space<vmem>>, vector<144x64xf32>
    %cst_7 = arith.constant dense<0.000000e+00> : vector<144x16xf32>
    %10 = tpu.matmul %9, %8, %cst_7 {dimension_numbers = #tpu.dot_dimension_numbers<[1], [0], [0], [1], [0, 0, 1, 1], [], []>} : vector<144x64xf32>, vector<64x16xf32>, vector<144x16xf32> -> vector<144x16xf32>
    %c344 = arith.constant 344 : index
    %c0_8 = arith.constant 0 : index
    %11 = vector.load %arg3[%c344, %c0_8] : memref<352x64xf32, #tpu.memory_space<vmem>>, vector<1x32xf32>
    %cst_9 = arith.constant 0.000000e+00 : f32
    %12 = vector.broadcast %cst_9 : f32 to vector<16x32xf32>
    %cst_10 = arith.constant 0.000000e+00 : f32
    %13 = vector.broadcast %cst_10 : f32 to vector<16x32xf32>
    %cst_11 = arith.constant 0.000000e+00 : f32
    %14 = vector.broadcast %cst_11 : f32 to vector<16x32xf32>
    %15 = vector.extract_strided_slice %10 {offsets = [0, 0], sizes = [16, 16], strides = [1, 1]} : vector<144x16xf32> to vector<16x16xf32>
    %c200 = arith.constant 200 : index
    %c0_12 = arith.constant 0 : index
    %16 = vector.load %arg3[%c200, %c0_12] : memref<352x64xf32, #tpu.memory_space<vmem>>, vector<16x32xf32>
    %cst_13 = arith.constant dense<0.000000e+00> : vector<16x32xf32>
    %17 = tpu.matmul %15, %16, %cst_13 {dimension_numbers = #tpu.dot_dimension_numbers<[1], [0], [0], [1], [0, 0, 1, 1], [], []>} : vector<16x16xf32>, vector<16x32xf32>, vector<16x32xf32> -> vector<16x32xf32>
    %18 = arith.addf %12, %17 : vector<16x32xf32>
    %19 = vector.extract_strided_slice %10 {offsets = [16, 0], sizes = [16, 16], strides = [1, 1]} : vector<144x16xf32> to vector<16x16xf32>
    %c216 = arith.constant 216 : index
    %c0_14 = arith.constant 0 : index
    %20 = vector.load %arg3[%c216, %c0_14] : memref<352x64xf32, #tpu.memory_space<vmem>>, vector<16x32xf32>
    %cst_15 = arith.constant dense<0.000000e+00> : vector<16x32xf32>
    %21 = tpu.matmul %19, %20, %cst_15 {dimension_numbers = #tpu.dot_dimension_numbers<[1], [0], [0], [1], [0, 0, 1, 1], [], []>} : vector<16x16xf32>, vector<16x32xf32>, vector<16x32xf32> -> vector<16x32xf32>
    %22 = arith.addf %13, %21 : vector<16x32xf32>
    %23 = vector.extract_strided_slice %10 {offsets = [32, 0], sizes = [16, 16], strides = [1, 1]} : vector<144x16xf32> to vector<16x16xf32>
    %c232 = arith.constant 232 : index
    %c0_16 = arith.constant 0 : index
    %24 = vector.load %arg3[%c232, %c0_16] : memref<352x64xf32, #tpu.memory_space<vmem>>, vector<16x32xf32>
    %cst_17 = arith.constant dense<0.000000e+00> : vector<16x32xf32>
    %25 = tpu.matmul %23, %24, %cst_17 {dimension_numbers = #tpu.dot_dimension_numbers<[1], [0], [0], [1], [0, 0, 1, 1], [], []>} : vector<16x16xf32>, vector<16x32xf32>, vector<16x32xf32> -> vector<16x32xf32>
    %26 = arith.addf %14, %25 : vector<16x32xf32>
    %27 = vector.extract_strided_slice %10 {offsets = [48, 0], sizes = [16, 16], strides = [1, 1]} : vector<144x16xf32> to vector<16x16xf32>
    %c248 = arith.constant 248 : index
    %c0_18 = arith.constant 0 : index
    %28 = vector.load %arg3[%c248, %c0_18] : memref<352x64xf32, #tpu.memory_space<vmem>>, vector<16x32xf32>
    %cst_19 = arith.constant dense<0.000000e+00> : vector<16x32xf32>
    %29 = tpu.matmul %27, %28, %cst_19 {dimension_numbers = #tpu.dot_dimension_numbers<[1], [0], [0], [1], [0, 0, 1, 1], [], []>} : vector<16x16xf32>, vector<16x32xf32>, vector<16x32xf32> -> vector<16x32xf32>
    %30 = arith.addf %18, %29 : vector<16x32xf32>
    %31 = vector.extract_strided_slice %10 {offsets = [64, 0], sizes = [16, 16], strides = [1, 1]} : vector<144x16xf32> to vector<16x16xf32>
    %c264 = arith.constant 264 : index
    %c0_20 = arith.constant 0 : index
    %32 = vector.load %arg3[%c264, %c0_20] : memref<352x64xf32, #tpu.memory_space<vmem>>, vector<16x32xf32>
    %cst_21 = arith.constant dense<0.000000e+00> : vector<16x32xf32>
    %33 = tpu.matmul %31, %32, %cst_21 {dimension_numbers = #tpu.dot_dimension_numbers<[1], [0], [0], [1], [0, 0, 1, 1], [], []>} : vector<16x16xf32>, vector<16x32xf32>, vector<16x32xf32> -> vector<16x32xf32>
    %34 = arith.addf %22, %33 : vector<16x32xf32>
    %35 = vector.extract_strided_slice %10 {offsets = [80, 0], sizes = [16, 16], strides = [1, 1]} : vector<144x16xf32> to vector<16x16xf32>
    %c280 = arith.constant 280 : index
    %c0_22 = arith.constant 0 : index
    %36 = vector.load %arg3[%c280, %c0_22] : memref<352x64xf32, #tpu.memory_space<vmem>>, vector<16x32xf32>
    %cst_23 = arith.constant dense<0.000000e+00> : vector<16x32xf32>
    %37 = tpu.matmul %35, %36, %cst_23 {dimension_numbers = #tpu.dot_dimension_numbers<[1], [0], [0], [1], [0, 0, 1, 1], [], []>} : vector<16x16xf32>, vector<16x32xf32>, vector<16x32xf32> -> vector<16x32xf32>
    %38 = arith.addf %26, %37 : vector<16x32xf32>
    %39 = vector.extract_strided_slice %10 {offsets = [96, 0], sizes = [16, 16], strides = [1, 1]} : vector<144x16xf32> to vector<16x16xf32>
    %c296 = arith.constant 296 : index
    %c0_24 = arith.constant 0 : index
    %40 = vector.load %arg3[%c296, %c0_24] : memref<352x64xf32, #tpu.memory_space<vmem>>, vector<16x32xf32>
    %cst_25 = arith.constant dense<0.000000e+00> : vector<16x32xf32>
    %41 = tpu.matmul %39, %40, %cst_25 {dimension_numbers = #tpu.dot_dimension_numbers<[1], [0], [0], [1], [0, 0, 1, 1], [], []>} : vector<16x16xf32>, vector<16x32xf32>, vector<16x32xf32> -> vector<16x32xf32>
    %42 = arith.addf %30, %41 : vector<16x32xf32>
    %43 = vector.extract_strided_slice %10 {offsets = [112, 0], sizes = [16, 16], strides = [1, 1]} : vector<144x16xf32> to vector<16x16xf32>
    %c312 = arith.constant 312 : index
    %c0_26 = arith.constant 0 : index
    %44 = vector.load %arg3[%c312, %c0_26] : memref<352x64xf32, #tpu.memory_space<vmem>>, vector<16x32xf32>
    %cst_27 = arith.constant dense<0.000000e+00> : vector<16x32xf32>
    %45 = tpu.matmul %43, %44, %cst_27 {dimension_numbers = #tpu.dot_dimension_numbers<[1], [0], [0], [1], [0, 0, 1, 1], [], []>} : vector<16x16xf32>, vector<16x32xf32>, vector<16x32xf32> -> vector<16x32xf32>
    %46 = arith.addf %34, %45 : vector<16x32xf32>
    %47 = vector.extract_strided_slice %10 {offsets = [128, 0], sizes = [16, 16], strides = [1, 1]} : vector<144x16xf32> to vector<16x16xf32>
    %c328 = arith.constant 328 : index
    %c0_28 = arith.constant 0 : index
    %48 = vector.load %arg3[%c328, %c0_28] : memref<352x64xf32, #tpu.memory_space<vmem>>, vector<16x32xf32>
    %cst_29 = arith.constant dense<0.000000e+00> : vector<16x32xf32>
    %49 = tpu.matmul %47, %48, %cst_29 {dimension_numbers = #tpu.dot_dimension_numbers<[1], [0], [0], [1], [0, 0, 1, 1], [], []>} : vector<16x16xf32>, vector<16x32xf32>, vector<16x32xf32> -> vector<16x32xf32>
    %50 = arith.addf %38, %49 : vector<16x32xf32>
    %51 = arith.addf %42, %46 : vector<16x32xf32>
    %52 = arith.addf %51, %50 : vector<16x32xf32>
    %53 = vector.broadcast %11 : vector<1x32xf32> to vector<16x32xf32>
    %54 = arith.addf %52, %53 : vector<16x32xf32>
    %cst_30 = arith.constant 0.000000e+00 : f32
    %55 = vector.broadcast %cst_30 : f32 to vector<16x32xf32>
    %56 = arith.maximumf %54, %55 : vector<16x32xf32>
    %cst_31 = arith.constant 0.000000e+00 : f32
    %57 = vector.broadcast %cst_31 : f32 to vector<1x256xf32>
    %cst_32 = arith.constant 0.000000e+00 : f32
    %58 = vector.broadcast %cst_32 : f32 to vector<1x256xf32>
    %cst_33 = arith.constant 0.000000e+00 : f32
    %59 = vector.broadcast %cst_33 : f32 to vector<1x256xf32>
    %c0_34 = arith.constant 0 : index
    %c0_35 = arith.constant 0 : index
    %60 = vector.load %arg4[%c0_34, %c0_35] : memref<304x256xf32, #tpu.memory_space<vmem>>, vector<32x256xf32>
    %61 = vector.extract_strided_slice %56 {offsets = [0, 0], sizes = [1, 32], strides = [1, 1]} : vector<16x32xf32> to vector<1x32xf32>
    %cst_36 = arith.constant dense<0.000000e+00> : vector<1x256xf32>
    %62 = tpu.matmul %61, %60, %cst_36 {dimension_numbers = #tpu.dot_dimension_numbers<[1], [0], [0], [1], [0, 0, 1, 1], [], []>} : vector<1x32xf32>, vector<32x256xf32>, vector<1x256xf32> -> vector<1x256xf32>
    %63 = arith.addf %57, %62 : vector<1x256xf32>
    %c32 = arith.constant 32 : index
    %c0_37 = arith.constant 0 : index
    %64 = vector.load %arg4[%c32, %c0_37] : memref<304x256xf32, #tpu.memory_space<vmem>>, vector<32x256xf32>
    %65 = vector.extract_strided_slice %56 {offsets = [1, 0], sizes = [1, 32], strides = [1, 1]} : vector<16x32xf32> to vector<1x32xf32>
    %cst_38 = arith.constant dense<0.000000e+00> : vector<1x256xf32>
    %66 = tpu.matmul %65, %64, %cst_38 {dimension_numbers = #tpu.dot_dimension_numbers<[1], [0], [0], [1], [0, 0, 1, 1], [], []>} : vector<1x32xf32>, vector<32x256xf32>, vector<1x256xf32> -> vector<1x256xf32>
    %67 = arith.addf %58, %66 : vector<1x256xf32>
    %c64 = arith.constant 64 : index
    %c0_39 = arith.constant 0 : index
    %68 = vector.load %arg4[%c64, %c0_39] : memref<304x256xf32, #tpu.memory_space<vmem>>, vector<32x256xf32>
    %69 = vector.extract_strided_slice %56 {offsets = [2, 0], sizes = [1, 32], strides = [1, 1]} : vector<16x32xf32> to vector<1x32xf32>
    %cst_40 = arith.constant dense<0.000000e+00> : vector<1x256xf32>
    %70 = tpu.matmul %69, %68, %cst_40 {dimension_numbers = #tpu.dot_dimension_numbers<[1], [0], [0], [1], [0, 0, 1, 1], [], []>} : vector<1x32xf32>, vector<32x256xf32>, vector<1x256xf32> -> vector<1x256xf32>
    %71 = arith.addf %59, %70 : vector<1x256xf32>
    %c96 = arith.constant 96 : index
    %c0_41 = arith.constant 0 : index
    %72 = vector.load %arg4[%c96, %c0_41] : memref<304x256xf32, #tpu.memory_space<vmem>>, vector<32x256xf32>
    %73 = vector.extract_strided_slice %56 {offsets = [3, 0], sizes = [1, 32], strides = [1, 1]} : vector<16x32xf32> to vector<1x32xf32>
    %cst_42 = arith.constant dense<0.000000e+00> : vector<1x256xf32>
    %74 = tpu.matmul %73, %72, %cst_42 {dimension_numbers = #tpu.dot_dimension_numbers<[1], [0], [0], [1], [0, 0, 1, 1], [], []>} : vector<1x32xf32>, vector<32x256xf32>, vector<1x256xf32> -> vector<1x256xf32>
    %75 = arith.addf %63, %74 : vector<1x256xf32>
    %c128 = arith.constant 128 : index
    %c0_43 = arith.constant 0 : index
    %76 = vector.load %arg4[%c128, %c0_43] : memref<304x256xf32, #tpu.memory_space<vmem>>, vector<32x256xf32>
    %77 = vector.extract_strided_slice %56 {offsets = [4, 0], sizes = [1, 32], strides = [1, 1]} : vector<16x32xf32> to vector<1x32xf32>
    %cst_44 = arith.constant dense<0.000000e+00> : vector<1x256xf32>
    %78 = tpu.matmul %77, %76, %cst_44 {dimension_numbers = #tpu.dot_dimension_numbers<[1], [0], [0], [1], [0, 0, 1, 1], [], []>} : vector<1x32xf32>, vector<32x256xf32>, vector<1x256xf32> -> vector<1x256xf32>
    %79 = arith.addf %67, %78 : vector<1x256xf32>
    %c160 = arith.constant 160 : index
    %c0_45 = arith.constant 0 : index
    %80 = vector.load %arg4[%c160, %c0_45] : memref<304x256xf32, #tpu.memory_space<vmem>>, vector<32x256xf32>
    %81 = vector.extract_strided_slice %56 {offsets = [5, 0], sizes = [1, 32], strides = [1, 1]} : vector<16x32xf32> to vector<1x32xf32>
    %cst_46 = arith.constant dense<0.000000e+00> : vector<1x256xf32>
    %82 = tpu.matmul %81, %80, %cst_46 {dimension_numbers = #tpu.dot_dimension_numbers<[1], [0], [0], [1], [0, 0, 1, 1], [], []>} : vector<1x32xf32>, vector<32x256xf32>, vector<1x256xf32> -> vector<1x256xf32>
    %83 = arith.addf %71, %82 : vector<1x256xf32>
    %c192_47 = arith.constant 192 : index
    %c0_48 = arith.constant 0 : index
    %84 = vector.load %arg4[%c192_47, %c0_48] : memref<304x256xf32, #tpu.memory_space<vmem>>, vector<32x256xf32>
    %85 = vector.extract_strided_slice %56 {offsets = [6, 0], sizes = [1, 32], strides = [1, 1]} : vector<16x32xf32> to vector<1x32xf32>
    %cst_49 = arith.constant dense<0.000000e+00> : vector<1x256xf32>
    %86 = tpu.matmul %85, %84, %cst_49 {dimension_numbers = #tpu.dot_dimension_numbers<[1], [0], [0], [1], [0, 0, 1, 1], [], []>} : vector<1x32xf32>, vector<32x256xf32>, vector<1x256xf32> -> vector<1x256xf32>
    %87 = arith.addf %75, %86 : vector<1x256xf32>
    %c224 = arith.constant 224 : index
    %c0_50 = arith.constant 0 : index
    %88 = vector.load %arg4[%c224, %c0_50] : memref<304x256xf32, #tpu.memory_space<vmem>>, vector<32x256xf32>
    %89 = vector.extract_strided_slice %56 {offsets = [7, 0], sizes = [1, 32], strides = [1, 1]} : vector<16x32xf32> to vector<1x32xf32>
    %cst_51 = arith.constant dense<0.000000e+00> : vector<1x256xf32>
    %90 = tpu.matmul %89, %88, %cst_51 {dimension_numbers = #tpu.dot_dimension_numbers<[1], [0], [0], [1], [0, 0, 1, 1], [], []>} : vector<1x32xf32>, vector<32x256xf32>, vector<1x256xf32> -> vector<1x256xf32>
    %91 = arith.addf %79, %90 : vector<1x256xf32>
    %c256 = arith.constant 256 : index
    %c0_52 = arith.constant 0 : index
    %92 = vector.load %arg4[%c256, %c0_52] : memref<304x256xf32, #tpu.memory_space<vmem>>, vector<32x256xf32>
    %93 = vector.extract_strided_slice %56 {offsets = [8, 0], sizes = [1, 32], strides = [1, 1]} : vector<16x32xf32> to vector<1x32xf32>
    %cst_53 = arith.constant dense<0.000000e+00> : vector<1x256xf32>
    %94 = tpu.matmul %93, %92, %cst_53 {dimension_numbers = #tpu.dot_dimension_numbers<[1], [0], [0], [1], [0, 0, 1, 1], [], []>} : vector<1x32xf32>, vector<32x256xf32>, vector<1x256xf32> -> vector<1x256xf32>
    %95 = arith.addf %83, %94 : vector<1x256xf32>
    %c288 = arith.constant 288 : index
    %c0_54 = arith.constant 0 : index
    %96 = vector.load %arg4[%c288, %c0_54] : memref<304x256xf32, #tpu.memory_space<vmem>>, vector<1x256xf32>
    %97 = arith.addf %87, %91 : vector<1x256xf32>
    %98 = arith.addf %97, %95 : vector<1x256xf32>
    %99 = arith.addf %98, %96 : vector<1x256xf32>
    %cst_55 = arith.constant 0.000000e+00 : f32
    %100 = vector.broadcast %cst_55 : f32 to vector<1x256xf32>
    %101 = arith.maximumf %99, %100 : vector<1x256xf32>
    %c296_56 = arith.constant 296 : index
    %c0_57 = arith.constant 0 : index
    %102 = vector.load %arg4[%c296_56, %c0_57] : memref<304x256xf32, #tpu.memory_space<vmem>>, vector<8x256xf32>
    %103 = vector.extract_strided_slice %102 {offsets = [0, 0], sizes = [2, 256], strides = [1, 1]} : vector<8x256xf32> to vector<2x256xf32>
    %104 = tpu.transpose %103, [1, 0] : vector<2x256xf32> -> vector<256x2xf32>
    %cst_58 = arith.constant dense<0.000000e+00> : vector<1x2xf32>
    %105 = tpu.matmul %101, %104, %cst_58 {dimension_numbers = #tpu.dot_dimension_numbers<[1], [0], [0], [1], [0, 0, 1, 1], [], []>} : vector<1x256xf32>, vector<256x2xf32>, vector<1x2xf32> -> vector<1x2xf32>
    %106 = vector.extract_strided_slice %102 {offsets = [2, 0], sizes = [1, 2], strides = [1, 1]} : vector<8x256xf32> to vector<1x2xf32>
    %107 = arith.addf %105, %106 : vector<1x2xf32>
    %c0_59 = arith.constant 0 : index
    %c0_60 = arith.constant 0 : index
    %c0_61 = arith.constant 0 : index
    %108 = vector.load %arg2[%c0_59, %c0_60, %c0_61] : memref<1x1x2xf32, #tpu.memory_space<vmem>>, vector<1x1x2xf32>
    %109 = vector.shape_cast %108 : vector<1x1x2xf32> to vector<1x2xf32>
    %cst_62 = arith.constant 9.99999968E-21 : f32
    %110 = vector.broadcast %cst_62 : f32 to vector<1x2xf32>
    %111 = arith.addf %109, %110 : vector<1x2xf32>
    %112 = math.log %111 : vector<1x2xf32>
    %cst_63 = arith.constant 0.000000e+00 : f32
    %113 = vector.broadcast %cst_63 : f32 to vector<1x2xf32>
    %114 = arith.subf %113, %112 : vector<1x2xf32>
    %cst_64 = arith.constant 9.99999968E-21 : f32
    %115 = vector.broadcast %cst_64 : f32 to vector<1x2xf32>
    %116 = arith.addf %114, %115 : vector<1x2xf32>
    %117 = math.log %116 : vector<1x2xf32>
    %cst_65 = arith.constant 0.000000e+00 : f32
    %118 = vector.broadcast %cst_65 : f32 to vector<1x2xf32>
    %119 = arith.subf %118, %117 : vector<1x2xf32>
    %120 = arith.addf %107, %119 : vector<1x2xf32>
    %cst_66 = arith.constant dense<0xFF800000> : vector<1xf32>
    %121 = vector.multi_reduction <maximumf>, %120, %cst_66 [1] : vector<1x2xf32> to vector<1xf32>
    %122 = vector.shape_cast %121 : vector<1xf32> to vector<1x1xf32>
    %123 = vector.broadcast %122 : vector<1x1xf32> to vector<1x2xf32>
    %124 = arith.subf %120, %123 : vector<1x2xf32>
    %125 = math.exp %124 : vector<1x2xf32>
    %cst_67 = arith.constant dense<0.000000e+00> : vector<1xf32>
    %126 = vector.multi_reduction <add>, %125, %cst_67 [1] : vector<1x2xf32> to vector<1xf32>
    %127 = vector.shape_cast %126 : vector<1xf32> to vector<1x1xf32>
    %128 = vector.broadcast %127 : vector<1x1xf32> to vector<1x2xf32>
    %129 = arith.divf %125, %128 : vector<1x2xf32>
    %c0_68 = arith.constant 0 : index
    %c0_69 = arith.constant 0 : index
    %c0_70 = arith.constant 0 : index
    %130 = vector.load %arg5[%c0_68, %c0_69, %c0_70] : memref<1x1x2xf32, #tpu.memory_space<vmem>>, vector<1x1x2xf32>
    %131 = vector.shape_cast %130 : vector<1x1x2xf32> to vector<1x2xf32>
    %132 = vector.shape_cast %129 : vector<1x2xf32> to vector<1x1x2xf32>
    tpu.vector_store %arg5[%c0_68, %c0_69, %c0_70], %132 {strides = array<i32>} : memref<1x1x2xf32, #tpu.memory_space<vmem>>, vector<1x1x2xf32>,
    return
  }
  func.func @transform_0(%arg0: i32) -> (i32, i32, i32) {
    %c0_i32 = arith.constant 0 : i32
    %c0_i32_0 = arith.constant 0 : i32
    %c0_i32_1 = arith.constant 0 : i32
    return %arg0, %c0_i32, %c0_i32_0 : i32, i32, i32
  }
  func.func @transform_1(%arg0: i32) -> (i32, i32, i32) {
    %c0_i32 = arith.constant 0 : i32
    %c0_i32_0 = arith.constant 0 : i32
    %c0_i32_1 = arith.constant 0 : i32
    return %arg0, %c0_i32, %c0_i32_0 : i32, i32, i32
  }
  func.func @transform_2(%arg0: i32) -> (i32, i32) {
    %c0_i32 = arith.constant 0 : i32
    %c0_i32_0 = arith.constant 0 : i32
    %c0_i32_1 = arith.constant 0 : i32
    return %c0_i32, %c0_i32_0 : i32, i32
  }
  func.func @transform_3(%arg0: i32) -> (i32, i32) {
    %c0_i32 = arith.constant 0 : i32
    %c0_i32_0 = arith.constant 0 : i32
    %c0_i32_1 = arith.constant 0 : i32
    return %c0_i32, %c0_i32_0 : i32, i32
  }
  func.func @transform_4(%arg0: i32) -> (i32, i32, i32) {
    %c0_i32 = arith.constant 0 : i32
    %c0_i32_0 = arith.constant 0 : i32
    %c0_i32_1 = arith.constant 0 : i32
    return %arg0, %c0_i32, %c0_i32_0 : i32, i32, i32
  }
}

</mosaic_0001>

<bundles_post_ra>
// kernel: squeeze.1
= control target key start
LH: loop header
LB: loop body
LE: loop exit
PB: predicated region body
PF: predicated region fallthrough
CT: control target
= control target key end

     0   :  { %2 = vsyncpa [#allocation1], 0  ;;  %s2101_s8 = smov [#allocation0]   ;;  %s4103_s0 = inlined_call_operand.hbm [shape: f32[2,3,1,32,32], index: 0, kind: input, shape index: {}]   ;;  %s4104_s1 = inlined_call_operand.vmem [shape: f32[2,3,8,4,8,4], index: 1, kind: output, shape index: {}]  }
   0x1   :  { %s6_s0 = sshll.u32 %s4103_s0, 4  ;;  %s8_s9 = sshll.u32 %s2101_s8, 4  ;;  %s7_s0 = int_to_ptr.hbm [resolvable:$true] %s6_s0  ;;  %s9_s9 = int_to_ptr.vmem [resolvable:$true] %s8_s9 }
   0x2   :  { %11 = dma.hbm_to_vmem [thread:$0]  %s7_s0, 3072, %s9_s9, [#allocation1]  }
   0x3   :  { %2099 = dma.done.wait [#allocation1], 3072  }
   0x4   :  { %2100 = vsyncadd [#allocation1], 4294964224  ;;  %v2122_v0 = vld [vmem:[#allocation0 + $0x10] sm:$0xff]   ;;  %v2124_v1 = vld [vmem:[#allocation0] sm:$0xff]   ;;  %s2102_s10 = smov 124   ;;  %s2103_s11 = smov 120  }
   0x5   :  { %198 = vrot.lane.b32.xlu1 %v2122_v0, %s2102_s10  ;;  %180 = vrot.lane.b32.xlu0 %v2124_v1, %s2102_s10  ;;  %v2130_v2 = vld [vmem:[#allocation0 + $0x20] sm:$0xff]   ;;  %v2134_v3 = vld [vmem:[#allocation0 + $0x18] sm:$0xff]   ;;  %v2136_v4 = vld [vmem:[#allocation0 + $0x8] sm:$0xff]   ;;  %vm15_vm0 = vcmask 31744   ;;  %s2104_s16 = smov 116   ;;  %s2105_s25 = smov 112  }
   0x6   :  { %216 = vrot.lane.b32.xlu2 %v2130_v2, %s2102_s10  ;;  %v2138_v5 = vld [vmem:[#allocation0 + $0x28] sm:$0xff]   ;;  %v2146_v6 = vld [vmem:[#allocation0 + $0x38] sm:$0xff]   ;;  %v2148_v7 = vld [vmem:[#allocation0 + $0x30] sm:$0xff]   ;;  %s2106_s5 = smov 108   ;;  %s2107_s17 = smov 104  }
   0x7   :  { %v2150_v8 = vld [vmem:[#allocation0 + $0x40] sm:$0xff]   ;;  %v2158_v9 = vld [vmem:[#allocation0 + $0x50] sm:$0xff]   ;;  %v2160_v10 = vld [vmem:[#allocation0 + $0x48] sm:$0xff]   ;;  %s2108_s29 = smov 100  }
   0x8   :  { %v2162_v11 = vld [vmem:[#allocation0 + $0x58] sm:$0xff]   ;;  %v2170_v12 = vld [vmem:[#allocation0 + $0x68] sm:$0xff]   ;;  %v2172_v13 = vld [vmem:[#allocation0 + $0x60] sm:$0xff]  }
   0x9   :  { %v2174_v14 = vld [vmem:[#allocation0 + $0x70] sm:$0xff]   ;;  %v2182_v15 = vld [vmem:[#allocation0 + $0x80] sm:$0xff]   ;;  %v2184_v16 = vld [vmem:[#allocation0 + $0x78] sm:$0xff]  }
   0xa   :  { %v2186_v17 = vld [vmem:[#allocation0 + $0x88] sm:$0xff]   ;;  %v2194_v18 = vld [vmem:[#allocation0 + $0x98] sm:$0xff]   ;;  %v2196_v19 = vld [vmem:[#allocation0 + $0x90] sm:$0xff]  }
   0xb   :  { %v2198_v20 = vld [vmem:[#allocation0 + $0xa0] sm:$0xff]   ;;  %v2206_v21 = vld [vmem:[#allocation0 + $0xb0] sm:$0xff]   ;;  %v2208_v22 = vld [vmem:[#allocation0 + $0xa8] sm:$0xff]  }
   0xc   :  { %v2210_v23 = vld [vmem:[#allocation0 + $0xb8] sm:$0xff]  }
   0xd   :  { %207 = vrot.lane.b32.xlu1 %v2134_v3, %s2102_s10  ;;  %189 = vrot.lane.b32.xlu0 %v2136_v4, %s2102_s10 }
   0xe   :  { %225 = vrot.lane.b32.xlu2 %v2138_v5, %s2102_s10 }
  0x15   :  { %243 = vrot.lane.b32.xlu1 %v2146_v6, %s2102_s10  ;;  %234 = vrot.lane.b32.xlu0 %v2148_v7, %s2102_s10 }
  0x16   :  { %252 = vrot.lane.b32.xlu2 %v2150_v8, %s2102_s10 }
  0x1d   :  { %270 = vrot.lane.b32.xlu1 %v2158_v9, %s2102_s10  ;;  %261 = vrot.lane.b32.xlu0 %v2160_v10, %s2102_s10 }
  0x1e   :  { %279 = vrot.lane.b32.xlu2 %v2162_v11, %s2102_s10 }
  0x25   :  { %297 = vrot.lane.b32.xlu1 %v2170_v12, %s2102_s10  ;;  %288 = vrot.lane.b32.xlu0 %v2172_v13, %s2102_s10 }
  0x26   :  { %306 = vrot.lane.b32.xlu2 %v2174_v14, %s2102_s10 }
  0x2d   :  { %324 = vrot.lane.b32.xlu1 %v2182_v15, %s2102_s10  ;;  %315 = vrot.lane.b32.xlu0 %v2184_v16, %s2102_s10 }
  0x2e   :  { %333 = vrot.lane.b32.xlu2 %v2186_v17, %s2102_s10 }
  0x35   :  { %351 = vrot.lane.b32.xlu1 %v2194_v18, %s2102_s10  ;;  %342 = vrot.lane.b32.xlu0 %v2196_v19, %s2102_s10 }
  0x36   :  { %360 = vrot.lane.b32.xlu2 %v2198_v20, %s2102_s10 }
  0x3d   :  { %378 = vrot.lane.b32.xlu1 %v2206_v21, %s2102_s10  ;;  %369 = vrot.lane.b32.xlu0 %v2208_v22, %s2102_s10 }
  0x3e   :  { %387 = vrot.lane.b32.xlu2 %v2210_v23, %s2102_s10 }
  0x45   :  { %404 = vrot.lane.b32.xlu1 %v2136_v4, %s2103_s11  ;;  %395 = vrot.lane.b32.xlu0 %v2124_v1, %s2103_s11 }
  0x46   :  { %413 = vrot.lane.b32.xlu2 %v2122_v0, %s2103_s11 }
  0x4d   :  { %431 = vrot.lane.b32.xlu1 %v2130_v2, %s2103_s11  ;;  %422 = vrot.lane.b32.xlu0 %v2134_v3, %s2103_s11 }
  0x4e   :  { %440 = vrot.lane.b32.xlu2 %v2138_v5, %s2103_s11 }
  0x55   :  { %458 = vrot.lane.b32.xlu1 %v2146_v6, %s2103_s11  ;;  %449 = vrot.lane.b32.xlu0 %v2148_v7, %s2103_s11 }
  0x56   :  { %467 = vrot.lane.b32.xlu2 %v2150_v8, %s2103_s11 }
  0x5d   :  { %485 = vrot.lane.b32.xlu1 %v2158_v9, %s2103_s11  ;;  %476 = vrot.lane.b32.xlu0 %v2160_v10, %s2103_s11 }
  0x5e   :  { %494 = vrot.lane.b32.xlu2 %v2162_v11, %s2103_s11 }
  0x60   :  { %v217_v24 = vpop.permute.xlu2 %216  }
  0x61   :  { %1739 = vst.msk [vmem:[%s4104_s1 + $0x101] ss:$8 sm:$0xf] %vm15_vm0, %v217_v24  }
  0x62   :  { %1740 = vst.msk [vmem:[%s4104_s1 + $0x101] ss:$8 sm:$0xf0] %vm15_vm0, %v217_v24  }
  0x65   :  { %512 = vrot.lane.b32.xlu1 %v2170_v12, %s2103_s11  ;;  %503 = vrot.lane.b32.xlu0 %v2172_v13, %s2103_s11 }
  0x66   :  { %521 = vrot.lane.b32.xlu2 %v2174_v14, %s2103_s11 }
  0x68   :  { %v226_v25 = vpop.permute.xlu2 %225  }
  0x69   :  { %1741 = vst.msk [vmem:[%s4104_s1 + $0x141] ss:$8 sm:$0xf] %vm15_vm0, %v226_v25  }
  0x6a   :  { %1742 = vst.msk [vmem:[%s4104_s1 + $0x141] ss:$8 sm:$0xf0] %vm15_vm0, %v226_v25  }
  0x6d   :  { %539 = vrot.lane.b32.xlu1 %v2182_v15, %s2103_s11  ;;  %530 = vrot.lane.b32.xlu0 %v2184_v16, %s2103_s11 }
  0x6e   :  { %548 = vrot.lane.b32.xlu2 %v2186_v17, %s2103_s11 }
  0x70   :  { %v253_v26 = vpop.permute.xlu2 %252  }
  0x71   :  { %1747 = vst.msk [vmem:[%s4104_s1 + $0x201] ss:$8 sm:$0xf] %vm15_vm0, %v253_v26  }
  0x72   :  { %1748 = vst.msk [vmem:[%s4104_s1 + $0x201] ss:$8 sm:$0xf0] %vm15_vm0, %v253_v26  }
  0x75   :  { %566 = vrot.lane.b32.xlu1 %v2194_v18, %s2103_s11  ;;  %557 = vrot.lane.b32.xlu0 %v2196_v19, %s2103_s11 }
  0x76   :  { %575 = vrot.lane.b32.xlu2 %v2198_v20, %s2103_s11 }
  0x77   :  { %v199_v27 = vpop.permute.xlu1 %198   ;;  %v181_v28 = vpop.permute.xlu0 %180  }
  0x78   :  { %1735 = vst.msk [vmem:[%s4104_s1 + $0x81] ss:$8 sm:$0xf] %vm15_vm0, %v199_v27   ;;  %v280_v29 = vpop.permute.xlu2 %279  }
  0x79   :  { %1736 = vst.msk [vmem:[%s4104_s1 + $0x81] ss:$8 sm:$0xf0] %vm15_vm0, %v199_v27  }
  0x7a   :  { %1731 = vst.msk [vmem:[%s4104_s1 + $0x1] ss:$8 sm:$0xf] %vm15_vm0, %v181_v28  }
  0x7b   :  { %1732 = vst.msk [vmem:[%s4104_s1 + $0x1] ss:$8 sm:$0xf0] %vm15_vm0, %v181_v28  }
  0x7c   :  { %1753 = vst.msk [vmem:[%s4104_s1 + $0x2c1] ss:$8 sm:$0xf] %vm15_vm0, %v280_v29  }
  0x7d   :  { %593 = vrot.lane.b32.xlu1 %v2206_v21, %s2103_s11  ;;  %584 = vrot.lane.b32.xlu0 %v2208_v22, %s2103_s11  ;;  %1754 = vst.msk [vmem:[%s4104_s1 + $0x2c1] ss:$8 sm:$0xf0] %vm15_vm0, %v280_v29  }
  0x7e   :  { %602 = vrot.lane.b32.xlu2 %v2210_v23, %s2103_s11 }
  0x7f   :  { %v208_v30 = vpop.permute.xlu1 %207   ;;  %v190_v31 = vpop.permute.xlu0 %189  }
  0x80   :  { %1737 = vst.msk [vmem:[%s4104_s1 + $0xc1] ss:$8 sm:$0xf] %vm15_vm0, %v208_v30   ;;  %v307_v32 = vpop.permute.xlu2 %306  }
  0x81   :  { %1738 = vst.msk [vmem:[%s4104_s1 + $0xc1] ss:$8 sm:$0xf0] %vm15_vm0, %v208_v30  }
  0x82   :  { %1733 = vst.msk [vmem:[%s4104_s1 + $0x41] ss:$8 sm:$0xf] %vm15_vm0, %v190_v31  }
  0x83   :  { %1734 = vst.msk [vmem:[%s4104_s1 + $0x41] ss:$8 sm:$0xf0] %vm15_vm0, %v190_v31  }
  0x84   :  { %1759 = vst.msk [vmem:[%s4104_s1 + $0x381] ss:$8 sm:$0xf] %vm15_vm0, %v307_v32  }
  0x85   :  { %619 = vrot.lane.b32.xlu1 %v2136_v4, %s2104_s16  ;;  %610 = vrot.lane.b32.xlu0 %v2124_v1, %s2104_s16  ;;  %1760 = vst.msk [vmem:[%s4104_s1 + $0x381] ss:$8 sm:$0xf0] %vm15_vm0, %v307_v32  }
  0x86   :  { %628 = vrot.lane.b32.xlu2 %v2122_v0, %s2104_s16 }
  0x87   :  { %v244_v33 = vpop.permute.xlu1 %243   ;;  %v235_v34 = vpop.permute.xlu0 %234  }
  0x88   :  { %1745 = vst.msk [vmem:[%s4104_s1 + $0x1c1] ss:$8 sm:$0xf] %vm15_vm0, %v244_v33   ;;  %v334_v35 = vpop.permute.xlu2 %333  }
  0x89   :  { %1746 = vst.msk [vmem:[%s4104_s1 + $0x1c1] ss:$8 sm:$0xf0] %vm15_vm0, %v244_v33  }
  0x8a   :  { %1743 = vst.msk [vmem:[%s4104_s1 + $0x181] ss:$8 sm:$0xf] %vm15_vm0, %v235_v34  }
  0x8b   :  { %1744 = vst.msk [vmem:[%s4104_s1 + $0x181] ss:$8 sm:$0xf0] %vm15_vm0, %v235_v34  }
  0x8c   :  { %1765 = vst.msk [vmem:[%s4104_s1 + $0x441] ss:$8 sm:$0xf] %vm15_vm0, %v334_v35  }
  0x8d   :  { %646 = vrot.lane.b32.xlu1 %v2130_v2, %s2104_s16  ;;  %637 = vrot.lane.b32.xlu0 %v2134_v3, %s2104_s16  ;;  %1766 = vst.msk [vmem:[%s4104_s1 + $0x441] ss:$8 sm:$0xf0] %vm15_vm0, %v334_v35  }
  0x8e   :  { %655 = vrot.lane.b32.xlu2 %v2138_v5, %s2104_s16 }
  0x8f   :  { %v271_v36 = vpop.permute.xlu1 %270   ;;  %v262_v37 = vpop.permute.xlu0 %261  }
  0x90   :  { %1751 = vst.msk [vmem:[%s4104_s1 + $0x281] ss:$8 sm:$0xf] %vm15_vm0, %v271_v36   ;;  %v361_v38 = vpop.permute.xlu2 %360  }
  0x91   :  { %1752 = vst.msk [vmem:[%s4104_s1 + $0x281] ss:$8 sm:$0xf0] %vm15_vm0, %v271_v36  }
  0x92   :  { %1749 = vst.msk [vmem:[%s4104_s1 + $0x241] ss:$8 sm:$0xf] %vm15_vm0, %v262_v37  }
  0x93   :  { %1750 = vst.msk [vmem:[%s4104_s1 + $0x241] ss:$8 sm:$0xf0] %vm15_vm0, %v262_v37  }
  0x94   :  { %1771 = vst.msk [vmem:[%s4104_s1 + $0x501] ss:$8 sm:$0xf] %vm15_vm0, %v361_v38  }
  0x95   :  { %673 = vrot.lane.b32.xlu1 %v2146_v6, %s2104_s16  ;;  %664 = vrot.lane.b32.xlu0 %v2148_v7, %s2104_s16  ;;  %1772 = vst.msk [vmem:[%s4104_s1 + $0x501] ss:$8 sm:$0xf0] %vm15_vm0, %v361_v38  }
  0x96   :  { %682 = vrot.lane.b32.xlu2 %v2150_v8, %s2104_s16 }
  0x97   :  { %v298_v39 = vpop.permute.xlu1 %297   ;;  %v289_v40 = vpop.permute.xlu0 %288  }
  0x98   :  { %1757 = vst.msk [vmem:[%s4104_s1 + $0x341] ss:$8 sm:$0xf] %vm15_vm0, %v298_v39   ;;  %v388_v41 = vpop.permute.xlu2 %387  }
  0x99   :  { %1758 = vst.msk [vmem:[%s4104_s1 + $0x341] ss:$8 sm:$0xf0] %vm15_vm0, %v298_v39  }
  0x9a   :  { %1755 = vst.msk [vmem:[%s4104_s1 + $0x301] ss:$8 sm:$0xf] %vm15_vm0, %v289_v40  }
  0x9b   :  { %1756 = vst.msk [vmem:[%s4104_s1 + $0x301] ss:$8 sm:$0xf0] %vm15_vm0, %v289_v40  }
  0x9c   :  { %1777 = vst.msk [vmem:[%s4104_s1 + $0x5c1] ss:$8 sm:$0xf] %vm15_vm0, %v388_v41  }
  0x9d   :  { %700 = vrot.lane.b32.xlu1 %v2158_v9, %s2104_s16  ;;  %691 = vrot.lane.b32.xlu0 %v2160_v10, %s2104_s16  ;;  %1778 = vst.msk [vmem:[%s4104_s1 + $0x5c1] ss:$8 sm:$0xf0] %vm15_vm0, %v388_v41  }
  0x9e   :  { %709 = vrot.lane.b32.xlu2 %v2162_v11, %s2104_s16 }
  0x9f   :  { %v325_v42 = vpop.permute.xlu1 %324   ;;  %v316_v43 = vpop.permute.xlu0 %315  }
  0xa0   :  { %1763 = vst.msk [vmem:[%s4104_s1 + $0x401] ss:$8 sm:$0xf] %vm15_vm0, %v325_v42   ;;  %v414_v44 = vpop.permute.xlu2 %413  }
  0xa1   :  { %1764 = vst.msk [vmem:[%s4104_s1 + $0x401] ss:$8 sm:$0xf0] %vm15_vm0, %v325_v42  }
  0xa2   :  { %1761 = vst.msk [vmem:[%s4104_s1 + $0x3c1] ss:$8 sm:$0xf] %vm15_vm0, %v316_v43  }
  0xa3   :  { %1762 = vst.msk [vmem:[%s4104_s1 + $0x3c1] ss:$8 sm:$0xf0] %vm15_vm0, %v316_v43  }
  0xa4   :  { %1783 = vst.msk [vmem:[%s4104_s1 + $0x82] ss:$8 sm:$0xf] %vm15_vm0, %v414_v44  }
  0xa5   :  { %727 = vrot.lane.b32.xlu1 %v2170_v12, %s2104_s16  ;;  %718 = vrot.lane.b32.xlu0 %v2172_v13, %s2104_s16  ;;  %1784 = vst.msk [vmem:[%s4104_s1 + $0x82] ss:$8 sm:$0xf0] %vm15_vm0, %v414_v44  }
  0xa6   :  { %736 = vrot.lane.b32.xlu2 %v2174_v14, %s2104_s16 }
  0xa7   :  { %v352_v45 = vpop.permute.xlu1 %351   ;;  %v343_v46 = vpop.permute.xlu0 %342  }
  0xa8   :  { %1769 = vst.msk [vmem:[%s4104_s1 + $0x4c1] ss:$8 sm:$0xf] %vm15_vm0, %v352_v45   ;;  %v441_v47 = vpop.permute.xlu2 %440  }
  0xa9   :  { %1770 = vst.msk [vmem:[%s4104_s1 + $0x4c1] ss:$8 sm:$0xf0] %vm15_vm0, %v352_v45  }
  0xaa   :  { %1767 = vst.msk [vmem:[%s4104_s1 + $0x481] ss:$8 sm:$0xf] %vm15_vm0, %v343_v46  }
  0xab   :  { %1768 = vst.msk [vmem:[%s4104_s1 + $0x481] ss:$8 sm:$0xf0] %vm15_vm0, %v343_v46  }
  0xac   :  { %1789 = vst.msk [vmem:[%s4104_s1 + $0x142] ss:$8 sm:$0xf] %vm15_vm0, %v441_v47  }
  0xad   :  { %754 = vrot.lane.b32.xlu1 %v2182_v15, %s2104_s16  ;;  %745 = vrot.lane.b32.xlu0 %v2184_v16, %s2104_s16  ;;  %1790 = vst.msk [vmem:[%s4104_s1 + $0x142] ss:$8 sm:$0xf0] %vm15_vm0, %v441_v47  }
  0xae   :  { %763 = vrot.lane.b32.xlu2 %v2186_v17, %s2104_s16 }
  0xaf   :  { %v379_v48 = vpop.permute.xlu1 %378   ;;  %v370_v49 = vpop.permute.xlu0 %369  }
  0xb0   :  { %1775 = vst.msk [vmem:[%s4104_s1 + $0x581] ss:$8 sm:$0xf] %vm15_vm0, %v379_v48   ;;  %v468_v50 = vpop.permute.xlu2 %467  }
  0xb1   :  { %1776 = vst.msk [vmem:[%s4104_s1 + $0x581] ss:$8 sm:$0xf0] %vm15_vm0, %v379_v48  }
  0xb2   :  { %1773 = vst.msk [vmem:[%s4104_s1 + $0x541] ss:$8 sm:$0xf] %vm15_vm0, %v370_v49  }
  0xb3   :  { %1774 = vst.msk [vmem:[%s4104_s1 + $0x541] ss:$8 sm:$0xf0] %vm15_vm0, %v370_v49  }
  0xb4   :  { %1795 = vst.msk [vmem:[%s4104_s1 + $0x202] ss:$8 sm:$0xf] %vm15_vm0, %v468_v50  }
  0xb5   :  { %781 = vrot.lane.b32.xlu1 %v2194_v18, %s2104_s16  ;;  %772 = vrot.lane.b32.xlu0 %v2196_v19, %s2104_s16  ;;  %1796 = vst.msk [vmem:[%s4104_s1 + $0x202] ss:$8 sm:$0xf0] %vm15_vm0, %v468_v50  }
  0xb6   :  { %790 = vrot.lane.b32.xlu2 %v2198_v20, %s2104_s16 }
  0xb7   :  { %v405_v51 = vpop.permute.xlu1 %404   ;;  %v396_v52 = vpop.permute.xlu0 %395  }
  0xb8   :  { %1781 = vst.msk [vmem:[%s4104_s1 + $0x42] ss:$8 sm:$0xf] %vm15_vm0, %v405_v51   ;;  %v495_v53 = vpop.permute.xlu2 %494  }
  0xb9   :  { %1782 = vst.msk [vmem:[%s4104_s1 + $0x42] ss:$8 sm:$0xf0] %vm15_vm0, %v405_v51  }
  0xba   :  { %1779 = vst.msk [vmem:[%s4104_s1 + $0x2] ss:$8 sm:$0xf] %vm15_vm0, %v396_v52  }
  0xbb   :  { %1780 = vst.msk [vmem:[%s4104_s1 + $0x2] ss:$8 sm:$0xf0] %vm15_vm0, %v396_v52  }
  0xbc   :  { %1801 = vst.msk [vmem:[%s4104_s1 + $0x2c2] ss:$8 sm:$0xf] %vm15_vm0, %v495_v53  }
  0xbd   :  { %808 = vrot.lane.b32.xlu1 %v2206_v21, %s2104_s16  ;;  %799 = vrot.lane.b32.xlu0 %v2208_v22, %s2104_s16  ;;  %1802 = vst.msk [vmem:[%s4104_s1 + $0x2c2] ss:$8 sm:$0xf0] %vm15_vm0, %v495_v53  }
  0xbe   :  { %817 = vrot.lane.b32.xlu2 %v2210_v23, %s2104_s16 }
  0xbf   :  { %v432_v54 = vpop.permute.xlu1 %431   ;;  %v423_v55 = vpop.permute.xlu0 %422  }
  0xc0   :  { %1787 = vst.msk [vmem:[%s4104_s1 + $0x102] ss:$8 sm:$0xf] %vm15_vm0, %v432_v54   ;;  %v522_v56 = vpop.permute.xlu2 %521  }
  0xc1   :  { %1788 = vst.msk [vmem:[%s4104_s1 + $0x102] ss:$8 sm:$0xf0] %vm15_vm0, %v432_v54  }
  0xc2   :  { %1785 = vst.msk [vmem:[%s4104_s1 + $0xc2] ss:$8 sm:$0xf] %vm15_vm0, %v423_v55  }
  0xc3   :  { %1786 = vst.msk [vmem:[%s4104_s1 + $0xc2] ss:$8 sm:$0xf0] %vm15_vm0, %v423_v55  }
  0xc4   :  { %1807 = vst.msk [vmem:[%s4104_s1 + $0x382] ss:$8 sm:$0xf] %vm15_vm0, %v522_v56  }
  0xc5   :  { %834 = vrot.lane.b32.xlu1 %v2136_v4, %s2105_s25  ;;  %825 = vrot.lane.b32.xlu0 %v2124_v1, %s2105_s25  ;;  %1808 = vst.msk [vmem:[%s4104_s1 + $0x382] ss:$8 sm:$0xf0] %vm15_vm0, %v522_v56  }
  0xc6   :  { %843 = vrot.lane.b32.xlu2 %v2122_v0, %s2105_s25 }
  0xc7   :  { %v459_v57 = vpop.permute.xlu1 %458   ;;  %v450_v58 = vpop.permute.xlu0 %449  }
  0xc8   :  { %1793 = vst.msk [vmem:[%s4104_s1 + $0x1c2] ss:$8 sm:$0xf] %vm15_vm0, %v459_v57   ;;  %v549_v59 = vpop.permute.xlu2 %548  }
  0xc9   :  { %1794 = vst.msk [vmem:[%s4104_s1 + $0x1c2] ss:$8 sm:$0xf0] %vm15_vm0, %v459_v57  }
  0xca   :  { %1791 = vst.msk [vmem:[%s4104_s1 + $0x182] ss:$8 sm:$0xf] %vm15_vm0, %v450_v58  }
  0xcb   :  { %1792 = vst.msk [vmem:[%s4104_s1 + $0x182] ss:$8 sm:$0xf0] %vm15_vm0, %v450_v58   ;;  %v3226_v58 = vld [vmem:[#allocation0 + $0x68] sm:$0xff]  }
  0xcc   :  { %1813 = vst.msk [vmem:[%s4104_s1 + $0x442] ss:$8 sm:$0xf] %vm15_vm0, %v549_v59  }
  0xcd   :  { %861 = vrot.lane.b32.xlu1 %v2130_v2, %s2105_s25  ;;  %852 = vrot.lane.b32.xlu0 %v2134_v3, %s2105_s25  ;;  %1814 = vst.msk [vmem:[%s4104_s1 + $0x442] ss:$8 sm:$0xf0] %vm15_vm0, %v549_v59   ;;  %v3236_v59 = vld [vmem:[#allocation0 + $0x70] sm:$0xff]  }
  0xce   :  { %870 = vrot.lane.b32.xlu2 %v2138_v5, %s2105_s25  ;;  %1709 = vst.msk [vmem:[%s4104_s1 + $0x340] ss:$8 sm:$0xf] %vm15_vm0, %v3226_v58  }
  0xcf   :  { %v486_v60 = vpop.permute.xlu1 %485   ;;  %v477_v61 = vpop.permute.xlu0 %476   ;;  %1710 = vst.msk [vmem:[%s4104_s1 + $0x340] ss:$8 sm:$0xf0] %vm15_vm0, %v3226_v58  }
  0xd0   :  { %1799 = vst.msk [vmem:[%s4104_s1 + $0x282] ss:$8 sm:$0xf] %vm15_vm0, %v486_v60   ;;  %v576_v62 = vpop.permute.xlu2 %575  }
  0xd1   :  { %1800 = vst.msk [vmem:[%s4104_s1 + $0x282] ss:$8 sm:$0xf0] %vm15_vm0, %v486_v60   ;;  %v3246_v60 = vld [vmem:[#allocation0] sm:$0xff]  }
  0xd2   :  { %1797 = vst.msk [vmem:[%s4104_s1 + $0x242] ss:$8 sm:$0xf] %vm15_vm0, %v477_v61  }
  0xd3   :  { %1798 = vst.msk [vmem:[%s4104_s1 + $0x242] ss:$8 sm:$0xf0] %vm15_vm0, %v477_v61  }
  0xd4   :  { %1819 = vst.msk [vmem:[%s4104_s1 + $0x502] ss:$8 sm:$0xf] %vm15_vm0, %v576_v62  }
  0xd5   :  { %888 = vrot.lane.b32.xlu1 %v2146_v6, %s2105_s25  ;;  %879 = vrot.lane.b32.xlu0 %v2148_v7, %s2105_s25  ;;  %1820 = vst.msk [vmem:[%s4104_s1 + $0x502] ss:$8 sm:$0xf0] %vm15_vm0, %v576_v62  }
  0xd6   :  { %897 = vrot.lane.b32.xlu2 %v2150_v8, %s2105_s25  ;;  %16 = vst.msk [vmem:[%s4104_s1] ss:$8 sm:$0xf] %vm15_vm0, %v3246_v60  }
  0xd7   :  { %v513_v63 = vpop.permute.xlu1 %512   ;;  %v504_v24 = vpop.permute.xlu0 %503   ;;  %17 = vst.msk [vmem:[%s4104_s1] ss:$8 sm:$0xf0] %vm15_vm0, %v3246_v60  }
  0xd8   :  { %1805 = vst.msk [vmem:[%s4104_s1 + $0x342] ss:$8 sm:$0xf] %vm15_vm0, %v513_v63   ;;  %v603_v25 = vpop.permute.xlu2 %602  }
  0xd9   :  { %1806 = vst.msk [vmem:[%s4104_s1 + $0x342] ss:$8 sm:$0xf0] %vm15_vm0, %v513_v63  }
  0xda   :  { %1803 = vst.msk [vmem:[%s4104_s1 + $0x302] ss:$8 sm:$0xf] %vm15_vm0, %v504_v24  }
  0xdb   :  { %1804 = vst.msk [vmem:[%s4104_s1 + $0x302] ss:$8 sm:$0xf0] %vm15_vm0, %v504_v24   ;;  %v3272_v24 = vld [vmem:[#allocation0 + $0x80] sm:$0xff]  }
  0xdc   :  { %1825 = vst.msk [vmem:[%s4104_s1 + $0x5c2] ss:$8 sm:$0xf] %vm15_vm0, %v603_v25  }
  0xdd   :  { %915 = vrot.lane.b32.xlu1 %v2158_v9, %s2105_s25  ;;  %906 = vrot.lane.b32.xlu0 %v2160_v10, %s2105_s25  ;;  %1826 = vst.msk [vmem:[%s4104_s1 + $0x5c2] ss:$8 sm:$0xf0] %vm15_vm0, %v603_v25   ;;  %v3274_v25 = vld [vmem:[#allocation0 + $0x78] sm:$0xff]  }
  0xde   :  { %924 = vrot.lane.b32.xlu2 %v2162_v11, %s2105_s25  ;;  %1711 = vst.msk [vmem:[%s4104_s1 + $0x380] ss:$8 sm:$0xf] %vm15_vm0, %v3236_v59  }
  0xdf   :  { %v540_v26 = vpop.permute.xlu1 %539   ;;  %v531_v27 = vpop.permute.xlu0 %530   ;;  %1712 = vst.msk [vmem:[%s4104_s1 + $0x380] ss:$8 sm:$0xf0] %vm15_vm0, %v3236_v59  }
  0xe0   :  { %1811 = vst.msk [vmem:[%s4104_s1 + $0x402] ss:$8 sm:$0xf] %vm15_vm0, %v540_v26   ;;  %v629_v28 = vpop.permute.xlu2 %628  }
  0xe1   :  { %1812 = vst.msk [vmem:[%s4104_s1 + $0x402] ss:$8 sm:$0xf0] %vm15_vm0, %v540_v26   ;;  %v3284_v26 = vld [vmem:[#allocation0 + $0x88] sm:$0xff]  }
  0xe2   :  { %1809 = vst.msk [vmem:[%s4104_s1 + $0x3c2] ss:$8 sm:$0xf] %vm15_vm0, %v531_v27  }
  0xe3   :  { %1810 = vst.msk [vmem:[%s4104_s1 + $0x3c2] ss:$8 sm:$0xf0] %vm15_vm0, %v531_v27   ;;  %v1478_v27 = vld [vmem:[#allocation0 + $0x8] sm:$0xff]  }
  0xe4   :  { %1831 = vst.msk [vmem:[%s4104_s1 + $0x83] ss:$8 sm:$0xf] %vm15_vm0, %v629_v28  }
  0xe5   :  { %942 = vrot.lane.b32.xlu1 %v2170_v12, %s2105_s25  ;;  %933 = vrot.lane.b32.xlu0 %v2172_v13, %s2105_s25  ;;  %1832 = vst.msk [vmem:[%s4104_s1 + $0x83] ss:$8 sm:$0xf0] %vm15_vm0, %v629_v28  }
  0xe6   :  { %951 = vrot.lane.b32.xlu2 %v2174_v14, %s2105_s25  ;;  %1685 = vst.msk [vmem:[%s4104_s1 + $0x40] ss:$8 sm:$0xf] %vm15_vm0, %v1478_v27  }
  0xe7   :  { %v567_v29 = vpop.permute.xlu1 %566   ;;  %v558_v30 = vpop.permute.xlu0 %557   ;;  %1686 = vst.msk [vmem:[%s4104_s1 + $0x40] ss:$8 sm:$0xf0] %vm15_vm0, %v1478_v27  }
  0xe8   :  { %1817 = vst.msk [vmem:[%s4104_s1 + $0x4c2] ss:$8 sm:$0xf] %vm15_vm0, %v567_v29   ;;  %v656_v31 = vpop.permute.xlu2 %655  }
  0xe9   :  { %1818 = vst.msk [vmem:[%s4104_s1 + $0x4c2] ss:$8 sm:$0xf0] %vm15_vm0, %v567_v29  }
  0xea   :  { %1815 = vst.msk [vmem:[%s4104_s1 + $0x482] ss:$8 sm:$0xf] %vm15_vm0, %v558_v30  }
  0xeb   :  { %1816 = vst.msk [vmem:[%s4104_s1 + $0x482] ss:$8 sm:$0xf0] %vm15_vm0, %v558_v30  }
  0xec   :  { %1837 = vst.msk [vmem:[%s4104_s1 + $0x143] ss:$8 sm:$0xf] %vm15_vm0, %v656_v31  }
  0xed   :  { %969 = vrot.lane.b32.xlu1 %v2182_v15, %s2105_s25  ;;  %960 = vrot.lane.b32.xlu0 %v2184_v16, %s2105_s25  ;;  %1838 = vst.msk [vmem:[%s4104_s1 + $0x143] ss:$8 sm:$0xf0] %vm15_vm0, %v656_v31   ;;  %v3316_v31 = vld [vmem:[#allocation0 + $0x98] sm:$0xff]  }
  0xee   :  { %978 = vrot.lane.b32.xlu2 %v2186_v17, %s2105_s25  ;;  %1713 = vst.msk [vmem:[%s4104_s1 + $0x3c0] ss:$8 sm:$0xf] %vm15_vm0, %v3274_v25  }
  0xef   :  { %v594_v32 = vpop.permute.xlu1 %593   ;;  %v585_v33 = vpop.permute.xlu0 %584   ;;  %1714 = vst.msk [vmem:[%s4104_s1 + $0x3c0] ss:$8 sm:$0xf0] %vm15_vm0, %v3274_v25  }
  0xf0   :  { %1823 = vst.msk [vmem:[%s4104_s1 + $0x582] ss:$8 sm:$0xf] %vm15_vm0, %v594_v32   ;;  %v683_v34 = vpop.permute.xlu2 %682  }
  0xf1   :  { %1824 = vst.msk [vmem:[%s4104_s1 + $0x582] ss:$8 sm:$0xf0] %vm15_vm0, %v594_v32   ;;  %v3318_v32 = vld [vmem:[#allocation0 + $0x90] sm:$0xff]  }
  0xf2   :  { %1821 = vst.msk [vmem:[%s4104_s1 + $0x542] ss:$8 sm:$0xf] %vm15_vm0, %v585_v33  }
  0xf3   :  { %1822 = vst.msk [vmem:[%s4104_s1 + $0x542] ss:$8 sm:$0xf0] %vm15_vm0, %v585_v33   ;;  %v3328_v33 = vld [vmem:[#allocation0 + $0xa0] sm:$0xff]  }
  0xf4   :  { %1843 = vst.msk [vmem:[%s4104_s1 + $0x203] ss:$8 sm:$0xf] %vm15_vm0, %v683_v34  }
  0xf5   :  { %996 = vrot.lane.b32.xlu1 %v2194_v18, %s2105_s25  ;;  %987 = vrot.lane.b32.xlu0 %v2196_v19, %s2105_s25  ;;  %1844 = vst.msk [vmem:[%s4104_s1 + $0x203] ss:$8 sm:$0xf0] %vm15_vm0, %v683_v34   ;;  %v1496_v34 = vld [vmem:[#allocation0 + $0x18] sm:$0xff]  }
  0xf6   :  { %1005 = vrot.lane.b32.xlu2 %v2198_v20, %s2105_s25  ;;  %1689 = vst.msk [vmem:[%s4104_s1 + $0xc0] ss:$8 sm:$0xf] %vm15_vm0, %v1496_v34  }
  0xf7   :  { %v620_v35 = vpop.permute.xlu1 %619   ;;  %v611_v36 = vpop.permute.xlu0 %610   ;;  %1690 = vst.msk [vmem:[%s4104_s1 + $0xc0] ss:$8 sm:$0xf0] %vm15_vm0, %v1496_v34  }
  0xf8   :  { %1829 = vst.msk [vmem:[%s4104_s1 + $0x43] ss:$8 sm:$0xf] %vm15_vm0, %v620_v35   ;;  %v710_v37 = vpop.permute.xlu2 %709  }
  0xf9   :  { %1830 = vst.msk [vmem:[%s4104_s1 + $0x43] ss:$8 sm:$0xf0] %vm15_vm0, %v620_v35  }
  0xfa   :  { %1827 = vst.msk [vmem:[%s4104_s1 + $0x3] ss:$8 sm:$0xf] %vm15_vm0, %v611_v36  }
  0xfb   :  { %1828 = vst.msk [vmem:[%s4104_s1 + $0x3] ss:$8 sm:$0xf0] %vm15_vm0, %v611_v36  }
  0xfc   :  { %1849 = vst.msk [vmem:[%s4104_s1 + $0x2c3] ss:$8 sm:$0xf] %vm15_vm0, %v710_v37  }
  0xfd   :  { %1023 = vrot.lane.b32.xlu1 %v2206_v21, %s2105_s25  ;;  %1014 = vrot.lane.b32.xlu0 %v2208_v22, %s2105_s25  ;;  %1850 = vst.msk [vmem:[%s4104_s1 + $0x2c3] ss:$8 sm:$0xf0] %vm15_vm0, %v710_v37  }
  0xfe   :  { %1032 = vrot.lane.b32.xlu2 %v2210_v23, %s2105_s25  ;;  %1715 = vst.msk [vmem:[%s4104_s1 + $0x400] ss:$8 sm:$0xf] %vm15_vm0, %v3272_v24  }
  0xff   :  { %v647_v38 = vpop.permute.xlu1 %646   ;;  %v638_v39 = vpop.permute.xlu0 %637   ;;  %1716 = vst.msk [vmem:[%s4104_s1 + $0x400] ss:$8 sm:$0xf0] %vm15_vm0, %v3272_v24  }
 0x100   :  { %1835 = vst.msk [vmem:[%s4104_s1 + $0x103] ss:$8 sm:$0xf] %vm15_vm0, %v647_v38   ;;  %v737_v40 = vpop.permute.xlu2 %736  }
 0x101   :  { %1836 = vst.msk [vmem:[%s4104_s1 + $0x103] ss:$8 sm:$0xf0] %vm15_vm0, %v647_v38   ;;  %v3360_v38 = vld [vmem:[#allocation0 + $0xb0] sm:$0xff]  }
 0x102   :  { %1833 = vst.msk [vmem:[%s4104_s1 + $0xc3] ss:$8 sm:$0xf] %vm15_vm0, %v638_v39  }
 0x103   :  { %1834 = vst.msk [vmem:[%s4104_s1 + $0xc3] ss:$8 sm:$0xf0] %vm15_vm0, %v638_v39   ;;  %v3362_v39 = vld [vmem:[#allocation0 + $0xa8] sm:$0xff]  }
 0x104   :  { %1855 = vst.msk [vmem:[%s4104_s1 + $0x383] ss:$8 sm:$0xf] %vm15_vm0, %v737_v40  }
 0x105   :  { %1049 = vrot.lane.b32.xlu1 %v2136_v4, %s2106_s5  ;;  %1040 = vrot.lane.b32.xlu0 %v2124_v1, %s2106_s5  ;;  %1856 = vst.msk [vmem:[%s4104_s1 + $0x383] ss:$8 sm:$0xf0] %vm15_vm0, %v737_v40   ;;  %v3372_v40 = vld [vmem:[#allocation0 + $0xb8] sm:$0xff]  }
 0x106   :  { %1058 = vrot.lane.b32.xlu2 %v2122_v0, %s2106_s5  ;;  %1717 = vst.msk [vmem:[%s4104_s1 + $0x440] ss:$8 sm:$0xf] %vm15_vm0, %v3284_v26  }
 0x107   :  { %v674_v41 = vpop.permute.xlu1 %673   ;;  %v665_v42 = vpop.permute.xlu0 %664   ;;  %1718 = vst.msk [vmem:[%s4104_s1 + $0x440] ss:$8 sm:$0xf0] %vm15_vm0, %v3284_v26  }
 0x108   :  { %1841 = vst.msk [vmem:[%s4104_s1 + $0x1c3] ss:$8 sm:$0xf] %vm15_vm0, %v674_v41   ;;  %v764_v0 = vpop.permute.xlu2 %763  }
 0x109   :  { %1842 = vst.msk [vmem:[%s4104_s1 + $0x1c3] ss:$8 sm:$0xf0] %vm15_vm0, %v674_v41   ;;  %v1505_v41 = vld [vmem:[#allocation0 + $0x20] sm:$0xff]  }
 0x10a   :  { %1839 = vst.msk [vmem:[%s4104_s1 + $0x183] ss:$8 sm:$0xf] %vm15_vm0, %v665_v42  }
 0x10b   :  { %1840 = vst.msk [vmem:[%s4104_s1 + $0x183] ss:$8 sm:$0xf0] %vm15_vm0, %v665_v42  }
 0x10c   :  { %1861 = vst.msk [vmem:[%s4104_s1 + $0x443] ss:$8 sm:$0xf] %vm15_vm0, %v764_v0  }
 0x10d   :  { %1076 = vrot.lane.b32.xlu1 %v2130_v2, %s2106_s5  ;;  %1067 = vrot.lane.b32.xlu0 %v2134_v3, %s2106_s5  ;;  %1862 = vst.msk [vmem:[%s4104_s1 + $0x443] ss:$8 sm:$0xf0] %vm15_vm0, %v764_v0  }
 0x10e   :  { %1085 = vrot.lane.b32.xlu2 %v2138_v5, %s2106_s5  ;;  %1691 = vst.msk [vmem:[%s4104_s1 + $0x100] ss:$8 sm:$0xf] %vm15_vm0, %v1505_v41  }
 0x10f   :  { %v701_v43 = vpop.permute.xlu1 %700   ;;  %v692_v44 = vpop.permute.xlu0 %691   ;;  %1692 = vst.msk [vmem:[%s4104_s1 + $0x100] ss:$8 sm:$0xf0] %vm15_vm0, %v1505_v41  }
 0x110   :  { %1847 = vst.msk [vmem:[%s4104_s1 + $0x283] ss:$8 sm:$0xf] %vm15_vm0, %v701_v43   ;;  %v791_v5 = vpop.permute.xlu2 %790  }
 0x111   :  { %1848 = vst.msk [vmem:[%s4104_s1 + $0x283] ss:$8 sm:$0xf0] %vm15_vm0, %v701_v43  }
 0x112   :  { %1845 = vst.msk [vmem:[%s4104_s1 + $0x243] ss:$8 sm:$0xf] %vm15_vm0, %v692_v44  }
 0x113   :  { %1846 = vst.msk [vmem:[%s4104_s1 + $0x243] ss:$8 sm:$0xf0] %vm15_vm0, %v692_v44   ;;  %v1523_v44 = vld [vmem:[#allocation0 + $0x30] sm:$0xff]  }
 0x114   :  { %1867 = vst.msk [vmem:[%s4104_s1 + $0x503] ss:$8 sm:$0xf] %vm15_vm0, %v791_v5  }
 0x115   :  { %1103 = vrot.lane.b32.xlu1 %v2146_v6, %s2106_s5  ;;  %1094 = vrot.lane.b32.xlu0 %v2148_v7, %s2106_s5  ;;  %1868 = vst.msk [vmem:[%s4104_s1 + $0x503] ss:$8 sm:$0xf0] %vm15_vm0, %v791_v5  }
 0x116   :  { %1112 = vrot.lane.b32.xlu2 %v2150_v8, %s2106_s5  ;;  %1695 = vst.msk [vmem:[%s4104_s1 + $0x180] ss:$8 sm:$0xf] %vm15_vm0, %v1523_v44  }
 0x117   :  { %v728_v45 = vpop.permute.xlu1 %727   ;;  %v719_v46 = vpop.permute.xlu0 %718   ;;  %1696 = vst.msk [vmem:[%s4104_s1 + $0x180] ss:$8 sm:$0xf0] %vm15_vm0, %v1523_v44  }
 0x118   :  { %1853 = vst.msk [vmem:[%s4104_s1 + $0x343] ss:$8 sm:$0xf] %vm15_vm0, %v728_v45   ;;  %v818_v8 = vpop.permute.xlu2 %817  }
 0x119   :  { %1854 = vst.msk [vmem:[%s4104_s1 + $0x343] ss:$8 sm:$0xf0] %vm15_vm0, %v728_v45  }
 0x11a   :  { %1851 = vst.msk [vmem:[%s4104_s1 + $0x303] ss:$8 sm:$0xf] %vm15_vm0, %v719_v46  }
 0x11b   :  { %1852 = vst.msk [vmem:[%s4104_s1 + $0x303] ss:$8 sm:$0xf0] %vm15_vm0, %v719_v46  }
 0x11c   :  { %1873 = vst.msk [vmem:[%s4104_s1 + $0x5c3] ss:$8 sm:$0xf] %vm15_vm0, %v818_v8  }
 0x11d   :  { %1130 = vrot.lane.b32.xlu1 %v2158_v9, %s2106_s5  ;;  %1121 = vrot.lane.b32.xlu0 %v2160_v10, %s2106_s5  ;;  %1874 = vst.msk [vmem:[%s4104_s1 + $0x5c3] ss:$8 sm:$0xf0] %vm15_vm0, %v818_v8   ;;  %v1532_v8 = vld [vmem:[#allocation0 + $0x38] sm:$0xff]  }
 0x11e   :  { %1139 = vrot.lane.b32.xlu2 %v2162_v11, %s2106_s5  ;;  %1697 = vst.msk [vmem:[%s4104_s1 + $0x1c0] ss:$8 sm:$0xf] %vm15_vm0, %v1532_v8  }
 0x11f   :  { %v755_v47 = vpop.permute.xlu1 %754   ;;  %v746_v48 = vpop.permute.xlu0 %745   ;;  %1698 = vst.msk [vmem:[%s4104_s1 + $0x1c0] ss:$8 sm:$0xf0] %vm15_vm0, %v1532_v8  }
 0x120   :  { %1859 = vst.msk [vmem:[%s4104_s1 + $0x403] ss:$8 sm:$0xf] %vm15_vm0, %v755_v47   ;;  %v844_v11 = vpop.permute.xlu2 %843  }
 0x121   :  { %1860 = vst.msk [vmem:[%s4104_s1 + $0x403] ss:$8 sm:$0xf0] %vm15_vm0, %v755_v47  }
 0x122   :  { %1857 = vst.msk [vmem:[%s4104_s1 + $0x3c3] ss:$8 sm:$0xf] %vm15_vm0, %v746_v48  }
 0x123   :  { %1858 = vst.msk [vmem:[%s4104_s1 + $0x3c3] ss:$8 sm:$0xf0] %vm15_vm0, %v746_v48  }
 0x124   :  { %1879 = vst.msk [vmem:[%s4104_s1 + $0x84] ss:$8 sm:$0xf] %vm15_vm0, %v844_v11  }
 0x125   :  { %1157 = vrot.lane.b32.xlu1 %v2170_v12, %s2106_s5  ;;  %1148 = vrot.lane.b32.xlu0 %v2172_v13, %s2106_s5  ;;  %1880 = vst.msk [vmem:[%s4104_s1 + $0x84] ss:$8 sm:$0xf0] %vm15_vm0, %v844_v11  }
 0x126   :  { %1166 = vrot.lane.b32.xlu2 %v2174_v14, %s2106_s5  ;;  %1719 = vst.msk [vmem:[%s4104_s1 + $0x480] ss:$8 sm:$0xf] %vm15_vm0, %v3318_v32  }
 0x127   :  { %v782_v12 = vpop.permute.xlu1 %781   ;;  %v773_v13 = vpop.permute.xlu0 %772   ;;  %1720 = vst.msk [vmem:[%s4104_s1 + $0x480] ss:$8 sm:$0xf0] %vm15_vm0, %v3318_v32  }
 0x128   :  { %1865 = vst.msk [vmem:[%s4104_s1 + $0x4c3] ss:$8 sm:$0xf] %vm15_vm0, %v782_v12   ;;  %v871_v14 = vpop.permute.xlu2 %870  }
 0x129   :  { %1866 = vst.msk [vmem:[%s4104_s1 + $0x4c3] ss:$8 sm:$0xf0] %vm15_vm0, %v782_v12   ;;  %v1550_v12 = vld [vmem:[#allocation0 + $0x48] sm:$0xff]  }
 0x12a   :  { %1863 = vst.msk [vmem:[%s4104_s1 + $0x483] ss:$8 sm:$0xf] %vm15_vm0, %v773_v13  }
 0x12b   :  { %1864 = vst.msk [vmem:[%s4104_s1 + $0x483] ss:$8 sm:$0xf0] %vm15_vm0, %v773_v13  }
 0x12c   :  { %1885 = vst.msk [vmem:[%s4104_s1 + $0x144] ss:$8 sm:$0xf] %vm15_vm0, %v871_v14  }
 0x12d   :  { %1184 = vrot.lane.b32.xlu1 %v2182_v15, %s2106_s5  ;;  %1175 = vrot.lane.b32.xlu0 %v2184_v16, %s2106_s5  ;;  %1886 = vst.msk [vmem:[%s4104_s1 + $0x144] ss:$8 sm:$0xf0] %vm15_vm0, %v871_v14  }
 0x12e   :  { %1193 = vrot.lane.b32.xlu2 %v2186_v17, %s2106_s5  ;;  %1701 = vst.msk [vmem:[%s4104_s1 + $0x240] ss:$8 sm:$0xf] %vm15_vm0, %v1550_v12  }
 0x12f   :  { %v809_v15 = vpop.permute.xlu1 %808   ;;  %v800_v16 = vpop.permute.xlu0 %799   ;;  %1702 = vst.msk [vmem:[%s4104_s1 + $0x240] ss:$8 sm:$0xf0] %vm15_vm0, %v1550_v12  }
 0x130   :  { %1871 = vst.msk [vmem:[%s4104_s1 + $0x583] ss:$8 sm:$0xf] %vm15_vm0, %v809_v15   ;;  %v898_v17 = vpop.permute.xlu2 %897  }
 0x131   :  { %1872 = vst.msk [vmem:[%s4104_s1 + $0x583] ss:$8 sm:$0xf0] %vm15_vm0, %v809_v15  }
 0x132   :  { %1869 = vst.msk [vmem:[%s4104_s1 + $0x543] ss:$8 sm:$0xf] %vm15_vm0, %v800_v16  }
 0x133   :  { %1870 = vst.msk [vmem:[%s4104_s1 + $0x543] ss:$8 sm:$0xf0] %vm15_vm0, %v800_v16   ;;  %v1559_v16 = vld [vmem:[#allocation0 + $0x50] sm:$0xff]  }
 0x134   :  { %1891 = vst.msk [vmem:[%s4104_s1 + $0x204] ss:$8 sm:$0xf] %vm15_vm0, %v898_v17  }
 0x135   :  { %1211 = vrot.lane.b32.xlu1 %v2194_v18, %s2106_s5  ;;  %1202 = vrot.lane.b32.xlu0 %v2196_v19, %s2106_s5  ;;  %1892 = vst.msk [vmem:[%s4104_s1 + $0x204] ss:$8 sm:$0xf0] %vm15_vm0, %v898_v17  }
 0x136   :  { %1220 = vrot.lane.b32.xlu2 %v2198_v20, %s2106_s5  ;;  %1703 = vst.msk [vmem:[%s4104_s1 + $0x280] ss:$8 sm:$0xf] %vm15_vm0, %v1559_v16  }
 0x137   :  { %v835_v18 = vpop.permute.xlu1 %834   ;;  %v826_v19 = vpop.permute.xlu0 %825   ;;  %1704 = vst.msk [vmem:[%s4104_s1 + $0x280] ss:$8 sm:$0xf0] %vm15_vm0, %v1559_v16  }
 0x138   :  { %1877 = vst.msk [vmem:[%s4104_s1 + $0x44] ss:$8 sm:$0xf] %vm15_vm0, %v835_v18   ;;  %v925_v20 = vpop.permute.xlu2 %924  }
 0x139   :  { %1878 = vst.msk [vmem:[%s4104_s1 + $0x44] ss:$8 sm:$0xf0] %vm15_vm0, %v835_v18  }
 0x13a   :  { %1875 = vst.msk [vmem:[%s4104_s1 + $0x4] ss:$8 sm:$0xf] %vm15_vm0, %v826_v19  }
 0x13b   :  { %1876 = vst.msk [vmem:[%s4104_s1 + $0x4] ss:$8 sm:$0xf0] %vm15_vm0, %v826_v19  }
 0x13c   :  { %1897 = vst.msk [vmem:[%s4104_s1 + $0x2c4] ss:$8 sm:$0xf] %vm15_vm0, %v925_v20  }
 0x13d   :  { %1238 = vrot.lane.b32.xlu1 %v2206_v21, %s2106_s5  ;;  %1229 = vrot.lane.b32.xlu0 %v2208_v22, %s2106_s5  ;;  %1898 = vst.msk [vmem:[%s4104_s1 + $0x2c4] ss:$8 sm:$0xf0] %vm15_vm0, %v925_v20   ;;  %v3032_v21 = vld [vmem:[#allocation0 + $0x10] sm:$0xff]  }
 0x13e   :  { %1687 = vst.msk [vmem:[%s4104_s1 + $0x80] ss:$8 sm:$0xf] %vm15_vm0, %v3032_v21   ;;  %1247 = vrot.lane.b32.xlu2 %v2210_v23, %s2106_s5 }
 0x13f   :  { %v862_v22 = vpop.permute.xlu1 %861   ;;  %v853_v49 = vpop.permute.xlu0 %852   ;;  %1688 = vst.msk [vmem:[%s4104_s1 + $0x80] ss:$8 sm:$0xf0] %vm15_vm0, %v3032_v21  }
 0x140   :  { %1883 = vst.msk [vmem:[%s4104_s1 + $0x104] ss:$8 sm:$0xf] %vm15_vm0, %v862_v22   ;;  %v952_v23 = vpop.permute.xlu2 %951  }
 0x141   :  { %1884 = vst.msk [vmem:[%s4104_s1 + $0x104] ss:$8 sm:$0xf0] %vm15_vm0, %v862_v22  }
 0x142   :  { %1881 = vst.msk [vmem:[%s4104_s1 + $0xc4] ss:$8 sm:$0xf] %vm15_vm0, %v853_v49  }
 0x143   :  { %1882 = vst.msk [vmem:[%s4104_s1 + $0xc4] ss:$8 sm:$0xf0] %vm15_vm0, %v853_v49  }
 0x144   :  { %1903 = vst.msk [vmem:[%s4104_s1 + $0x384] ss:$8 sm:$0xf] %vm15_vm0, %v952_v23  }
 0x145   :  { %1264 = vrot.lane.b32.xlu1 %v2136_v4, %s2107_s17  ;;  %1255 = vrot.lane.b32.xlu0 %v2124_v1, %s2107_s17  ;;  %1904 = vst.msk [vmem:[%s4104_s1 + $0x384] ss:$8 sm:$0xf0] %vm15_vm0, %v952_v23   ;;  %v3074_v1 = vld [vmem:[#allocation0 + $0x28] sm:$0xff]  }
 0x146   :  { %1693 = vst.msk [vmem:[%s4104_s1 + $0x140] ss:$8 sm:$0xf] %vm15_vm0, %v3074_v1   ;;  %1273 = vrot.lane.b32.xlu2 %v3032_v21, %s2107_s17 }
 0x147   :  { %v889_v4 = vpop.permute.xlu1 %888   ;;  %v880_v50 = vpop.permute.xlu0 %879   ;;  %1694 = vst.msk [vmem:[%s4104_s1 + $0x140] ss:$8 sm:$0xf0] %vm15_vm0, %v3074_v1  }
 0x148   :  { %1889 = vst.msk [vmem:[%s4104_s1 + $0x1c4] ss:$8 sm:$0xf] %vm15_vm0, %v889_v4   ;;  %v979_v51 = vpop.permute.xlu2 %978  }
 0x149   :  { %1890 = vst.msk [vmem:[%s4104_s1 + $0x1c4] ss:$8 sm:$0xf0] %vm15_vm0, %v889_v4  }
 0x14a   :  { %1887 = vst.msk [vmem:[%s4104_s1 + $0x184] ss:$8 sm:$0xf] %vm15_vm0, %v880_v50  }
 0x14b   :  { %1888 = vst.msk [vmem:[%s4104_s1 + $0x184] ss:$8 sm:$0xf0] %vm15_vm0, %v880_v50  }
 0x14c   :  { %1909 = vst.msk [vmem:[%s4104_s1 + $0x444] ss:$8 sm:$0xf] %vm15_vm0, %v979_v51  }
 0x14d   :  { %1291 = vrot.lane.b32.xlu1 %v2130_v2, %s2107_s17  ;;  %1282 = vrot.lane.b32.xlu0 %v2134_v3, %s2107_s17  ;;  %1910 = vst.msk [vmem:[%s4104_s1 + $0x444] ss:$8 sm:$0xf0] %vm15_vm0, %v979_v51   ;;  %v3116_v2 = vld [vmem:[#allocation0 + $0x40] sm:$0xff]  }
 0x14e   :  { %1699 = vst.msk [vmem:[%s4104_s1 + $0x200] ss:$8 sm:$0xf] %vm15_vm0, %v3116_v2   ;;  %1300 = vrot.lane.b32.xlu2 %v3074_v1, %s2107_s17 }
 0x14f   :  { %v916_v3 = vpop.permute.xlu1 %915   ;;  %v907_v52 = vpop.permute.xlu0 %906   ;;  %1700 = vst.msk [vmem:[%s4104_s1 + $0x200] ss:$8 sm:$0xf0] %vm15_vm0, %v3116_v2  }
 0x150   :  { %1895 = vst.msk [vmem:[%s4104_s1 + $0x284] ss:$8 sm:$0xf] %vm15_vm0, %v916_v3   ;;  %v1006_v53 = vpop.permute.xlu2 %1005  }
 0x151   :  { %1896 = vst.msk [vmem:[%s4104_s1 + $0x284] ss:$8 sm:$0xf0] %vm15_vm0, %v916_v3  }
 0x152   :  { %1893 = vst.msk [vmem:[%s4104_s1 + $0x244] ss:$8 sm:$0xf] %vm15_vm0, %v907_v52  }
 0x153   :  { %1894 = vst.msk [vmem:[%s4104_s1 + $0x244] ss:$8 sm:$0xf0] %vm15_vm0, %v907_v52  }
 0x154   :  { %1915 = vst.msk [vmem:[%s4104_s1 + $0x504] ss:$8 sm:$0xf] %vm15_vm0, %v1006_v53  }
 0x155   :  { %1318 = vrot.lane.b32.xlu1 %v2146_v6, %s2107_s17  ;;  %1309 = vrot.lane.b32.xlu0 %v2148_v7, %s2107_s17  ;;  %1916 = vst.msk [vmem:[%s4104_s1 + $0x504] ss:$8 sm:$0xf0] %vm15_vm0, %v1006_v53   ;;  %v3158_v6 = vld [vmem:[#allocation0 + $0x58] sm:$0xff]  }
 0x156   :  { %1705 = vst.msk [vmem:[%s4104_s1 + $0x2c0] ss:$8 sm:$0xf] %vm15_vm0, %v3158_v6   ;;  %1327 = vrot.lane.b32.xlu2 %v3116_v2, %s2107_s17 }
 0x157   :  { %v943_v7 = vpop.permute.xlu1 %942   ;;  %v934_v54 = vpop.permute.xlu0 %933   ;;  %1706 = vst.msk [vmem:[%s4104_s1 + $0x2c0] ss:$8 sm:$0xf0] %vm15_vm0, %v3158_v6  }
 0x158   :  { %1901 = vst.msk [vmem:[%s4104_s1 + $0x344] ss:$8 sm:$0xf] %vm15_vm0, %v943_v7   ;;  %v1033_v55 = vpop.permute.xlu2 %1032  }
 0x159   :  { %1902 = vst.msk [vmem:[%s4104_s1 + $0x344] ss:$8 sm:$0xf0] %vm15_vm0, %v943_v7  }
 0x15a   :  { %1899 = vst.msk [vmem:[%s4104_s1 + $0x304] ss:$8 sm:$0xf] %vm15_vm0, %v934_v54  }
 0x15b   :  { %1900 = vst.msk [vmem:[%s4104_s1 + $0x304] ss:$8 sm:$0xf0] %vm15_vm0, %v934_v54  }
 0x15c   :  { %1921 = vst.msk [vmem:[%s4104_s1 + $0x5c4] ss:$8 sm:$0xf] %vm15_vm0, %v1033_v55  }
 0x15d   :  { %1345 = vrot.lane.b32.xlu1 %v2158_v9, %s2107_s17  ;;  %1336 = vrot.lane.b32.xlu0 %v2160_v10, %s2107_s17  ;;  %v3196_v9 = vld [vmem:[#allocation0 + $0x60] sm:$0xff]   ;;  %1922 = vst.msk [vmem:[%s4104_s1 + $0x5c4] ss:$8 sm:$0xf0] %vm15_vm0, %v1033_v55  }
 0x15e   :  { %1707 = vst.msk [vmem:[%s4104_s1 + $0x300] ss:$8 sm:$0xf] %vm15_vm0, %v3196_v9   ;;  %1354 = vrot.lane.b32.xlu2 %v3158_v6, %s2107_s17 }
 0x15f   :  { %v970_v10 = vpop.permute.xlu1 %969   ;;  %v961_v56 = vpop.permute.xlu0 %960   ;;  %1708 = vst.msk [vmem:[%s4104_s1 + $0x300] ss:$8 sm:$0xf0] %vm15_vm0, %v3196_v9  }
 0x160   :  { %1907 = vst.msk [vmem:[%s4104_s1 + $0x404] ss:$8 sm:$0xf] %vm15_vm0, %v970_v10   ;;  %v1059_v57 = vpop.permute.xlu2 %1058  }
 0x161   :  { %1908 = vst.msk [vmem:[%s4104_s1 + $0x404] ss:$8 sm:$0xf0] %vm15_vm0, %v970_v10  }
 0x162   :  { %1905 = vst.msk [vmem:[%s4104_s1 + $0x3c4] ss:$8 sm:$0xf] %vm15_vm0, %v961_v56  }
 0x163   :  { %1906 = vst.msk [vmem:[%s4104_s1 + $0x3c4] ss:$8 sm:$0xf0] %vm15_vm0, %v961_v56  }
 0x164   :  { %1927 = vst.msk [vmem:[%s4104_s1 + $0x85] ss:$8 sm:$0xf] %vm15_vm0, %v1059_v57  }
 0x165   :  { %1372 = vrot.lane.b32.xlu1 %v3226_v58, %s2107_s17  ;;  %1363 = vrot.lane.b32.xlu0 %v3196_v9, %s2107_s17  ;;  %1928 = vst.msk [vmem:[%s4104_s1 + $0x85] ss:$8 sm:$0xf0] %vm15_vm0, %v1059_v57  }
 0x166   :  { %1381 = vrot.lane.b32.xlu2 %v3236_v59, %s2107_s17  ;;  %1721 = vst.msk [vmem:[%s4104_s1 + $0x4c0] ss:$8 sm:$0xf] %vm15_vm0, %v3316_v31  }
 0x167   :  { %v997_v61 = vpop.permute.xlu1 %996   ;;  %v988_v62 = vpop.permute.xlu0 %987   ;;  %1722 = vst.msk [vmem:[%s4104_s1 + $0x4c0] ss:$8 sm:$0xf0] %vm15_vm0, %v3316_v31  }
 0x168   :  { %1913 = vst.msk [vmem:[%s4104_s1 + $0x4c4] ss:$8 sm:$0xf] %vm15_vm0, %v997_v61   ;;  %v1086_v63 = vpop.permute.xlu2 %1085  }
 0x169   :  { %1914 = vst.msk [vmem:[%s4104_s1 + $0x4c4] ss:$8 sm:$0xf0] %vm15_vm0, %v997_v61  }
 0x16a   :  { %1911 = vst.msk [vmem:[%s4104_s1 + $0x484] ss:$8 sm:$0xf] %vm15_vm0, %v988_v62  }
 0x16b   :  { %1912 = vst.msk [vmem:[%s4104_s1 + $0x484] ss:$8 sm:$0xf0] %vm15_vm0, %v988_v62  }
 0x16c   :  { %1933 = vst.msk [vmem:[%s4104_s1 + $0x145] ss:$8 sm:$0xf] %vm15_vm0, %v1086_v63  }
 0x16d   :  { %1399 = vrot.lane.b32.xlu1 %v3272_v24, %s2107_s17  ;;  %1390 = vrot.lane.b32.xlu0 %v3274_v25, %s2107_s17  ;;  %1934 = vst.msk [vmem:[%s4104_s1 + $0x145] ss:$8 sm:$0xf0] %vm15_vm0, %v1086_v63  }
 0x16e   :  { %1408 = vrot.lane.b32.xlu2 %v3284_v26, %s2107_s17  ;;  %1723 = vst.msk [vmem:[%s4104_s1 + $0x500] ss:$8 sm:$0xf] %vm15_vm0, %v3328_v33  }
 0x16f   :  { %v1024_v28 = vpop.permute.xlu1 %1023   ;;  %v1015_v29 = vpop.permute.xlu0 %1014   ;;  %1724 = vst.msk [vmem:[%s4104_s1 + $0x500] ss:$8 sm:$0xf0] %vm15_vm0, %v3328_v33  }
 0x170   :  { %1919 = vst.msk [vmem:[%s4104_s1 + $0x584] ss:$8 sm:$0xf] %vm15_vm0, %v1024_v28   ;;  %v1113_v30 = vpop.permute.xlu2 %1112  }
 0x171   :  { %1920 = vst.msk [vmem:[%s4104_s1 + $0x584] ss:$8 sm:$0xf0] %vm15_vm0, %v1024_v28  }
 0x172   :  { %1917 = vst.msk [vmem:[%s4104_s1 + $0x544] ss:$8 sm:$0xf] %vm15_vm0, %v1015_v29  }
 0x173   :  { %1918 = vst.msk [vmem:[%s4104_s1 + $0x544] ss:$8 sm:$0xf0] %vm15_vm0, %v1015_v29  }
 0x174   :  { %1939 = vst.msk [vmem:[%s4104_s1 + $0x205] ss:$8 sm:$0xf] %vm15_vm0, %v1113_v30  }
 0x175   :  { %1426 = vrot.lane.b32.xlu1 %v3316_v31, %s2107_s17  ;;  %1417 = vrot.lane.b32.xlu0 %v3318_v32, %s2107_s17  ;;  %1940 = vst.msk [vmem:[%s4104_s1 + $0x205] ss:$8 sm:$0xf0] %vm15_vm0, %v1113_v30  }
 0x176   :  { %1435 = vrot.lane.b32.xlu2 %v3328_v33, %s2107_s17  ;;  %1725 = vst.msk [vmem:[%s4104_s1 + $0x540] ss:$8 sm:$0xf] %vm15_vm0, %v3362_v39  }
 0x177   :  { %v1050_v35 = vpop.permute.xlu1 %1049   ;;  %v1041_v36 = vpop.permute.xlu0 %1040   ;;  %1726 = vst.msk [vmem:[%s4104_s1 + $0x540] ss:$8 sm:$0xf0] %vm15_vm0, %v3362_v39  }
 0x178   :  { %1925 = vst.msk [vmem:[%s4104_s1 + $0x45] ss:$8 sm:$0xf] %vm15_vm0, %v1050_v35   ;;  %v1140_v37 = vpop.permute.xlu2 %1139  }
 0x179   :  { %1926 = vst.msk [vmem:[%s4104_s1 + $0x45] ss:$8 sm:$0xf0] %vm15_vm0, %v1050_v35  }
 0x17a   :  { %1923 = vst.msk [vmem:[%s4104_s1 + $0x5] ss:$8 sm:$0xf] %vm15_vm0, %v1041_v36  }
 0x17b   :  { %1924 = vst.msk [vmem:[%s4104_s1 + $0x5] ss:$8 sm:$0xf0] %vm15_vm0, %v1041_v36  }
 0x17c   :  { %1945 = vst.msk [vmem:[%s4104_s1 + $0x2c5] ss:$8 sm:$0xf] %vm15_vm0, %v1140_v37  }
 0x17d   :  { %1453 = vrot.lane.b32.xlu1 %v3360_v38, %s2107_s17  ;;  %1444 = vrot.lane.b32.xlu0 %v3362_v39, %s2107_s17  ;;  %1946 = vst.msk [vmem:[%s4104_s1 + $0x2c5] ss:$8 sm:$0xf0] %vm15_vm0, %v1140_v37  }
 0x17e   :  { %1462 = vrot.lane.b32.xlu2 %v3372_v40, %s2107_s17  ;;  %1727 = vst.msk [vmem:[%s4104_s1 + $0x580] ss:$8 sm:$0xf] %vm15_vm0, %v3360_v38  }
 0x17f   :  { %v1077_v42 = vpop.permute.xlu1 %1076   ;;  %v1068_v0 = vpop.permute.xlu0 %1067   ;;  %1728 = vst.msk [vmem:[%s4104_s1 + $0x580] ss:$8 sm:$0xf0] %vm15_vm0, %v3360_v38  }
 0x180   :  { %1931 = vst.msk [vmem:[%s4104_s1 + $0x105] ss:$8 sm:$0xf] %vm15_vm0, %v1077_v42   ;;  %v1167_v43 = vpop.permute.xlu2 %1166  }
 0x181   :  { %1932 = vst.msk [vmem:[%s4104_s1 + $0x105] ss:$8 sm:$0xf0] %vm15_vm0, %v1077_v42  }
 0x182   :  { %1929 = vst.msk [vmem:[%s4104_s1 + $0xc5] ss:$8 sm:$0xf] %vm15_vm0, %v1068_v0  }
 0x183   :  { %1930 = vst.msk [vmem:[%s4104_s1 + $0xc5] ss:$8 sm:$0xf0] %vm15_vm0, %v1068_v0  }
 0x184   :  { %1951 = vst.msk [vmem:[%s4104_s1 + $0x385] ss:$8 sm:$0xf] %vm15_vm0, %v1167_v43  }
 0x185   :  { %1479 = vrot.lane.b32.xlu1 %v1478_v27, %s2108_s29  ;;  %1470 = vrot.lane.b32.xlu0 %v3246_v60, %s2108_s29  ;;  %1952 = vst.msk [vmem:[%s4104_s1 + $0x385] ss:$8 sm:$0xf0] %vm15_vm0, %v1167_v43  }
 0x186   :  { %1488 = vrot.lane.b32.xlu2 %v3032_v21, %s2108_s29  ;;  %1729 = vst.msk [vmem:[%s4104_s1 + $0x5c0] ss:$8 sm:$0xf] %vm15_vm0, %v3372_v40  }
 0x187   :  { %v1104_v5 = vpop.permute.xlu1 %1103   ;;  %v1095_v45 = vpop.permute.xlu0 %1094   ;;  %1730 = vst.msk [vmem:[%s4104_s1 + $0x5c0] ss:$8 sm:$0xf0] %vm15_vm0, %v3372_v40  }
 0x188   :  { %1937 = vst.msk [vmem:[%s4104_s1 + $0x1c5] ss:$8 sm:$0xf] %vm15_vm0, %v1104_v5   ;;  %v1194_v46 = vpop.permute.xlu2 %1193  }
 0x189   :  { %1938 = vst.msk [vmem:[%s4104_s1 + $0x1c5] ss:$8 sm:$0xf0] %vm15_vm0, %v1104_v5  }
 0x18a   :  { %1935 = vst.msk [vmem:[%s4104_s1 + $0x185] ss:$8 sm:$0xf] %vm15_vm0, %v1095_v45  }
 0x18b   :  { %1936 = vst.msk [vmem:[%s4104_s1 + $0x185] ss:$8 sm:$0xf0] %vm15_vm0, %v1095_v45  }
 0x18c   :  { %1957 = vst.msk [vmem:[%s4104_s1 + $0x445] ss:$8 sm:$0xf] %vm15_vm0, %v1194_v46  }
 0x18d   :  { %1506 = vrot.lane.b32.xlu1 %v1505_v41, %s2108_s29  ;;  %1497 = vrot.lane.b32.xlu0 %v1496_v34, %s2108_s29  ;;  %1958 = vst.msk [vmem:[%s4104_s1 + $0x445] ss:$8 sm:$0xf0] %vm15_vm0, %v1194_v46  }
 0x18e   :  { %1515 = vrot.lane.b32.xlu2 %v3074_v1, %s2108_s29 }
 0x18f   :  { %v1131_v47 = vpop.permute.xlu1 %1130   ;;  %v1122_v48 = vpop.permute.xlu0 %1121  }
 0x190   :  { %1943 = vst.msk [vmem:[%s4104_s1 + $0x285] ss:$8 sm:$0xf] %vm15_vm0, %v1131_v47   ;;  %v1221_v11 = vpop.permute.xlu2 %1220  }
 0x191   :  { %1944 = vst.msk [vmem:[%s4104_s1 + $0x285] ss:$8 sm:$0xf0] %vm15_vm0, %v1131_v47  }
 0x192   :  { %1941 = vst.msk [vmem:[%s4104_s1 + $0x245] ss:$8 sm:$0xf] %vm15_vm0, %v1122_v48  }
 0x193   :  { %1942 = vst.msk [vmem:[%s4104_s1 + $0x245] ss:$8 sm:$0xf0] %vm15_vm0, %v1122_v48  }
 0x194   :  { %1963 = vst.msk [vmem:[%s4104_s1 + $0x505] ss:$8 sm:$0xf] %vm15_vm0, %v1221_v11  }
 0x195   :  { %1533 = vrot.lane.b32.xlu1 %v1532_v8, %s2108_s29  ;;  %1524 = vrot.lane.b32.xlu0 %v1523_v44, %s2108_s29  ;;  %1964 = vst.msk [vmem:[%s4104_s1 + $0x505] ss:$8 sm:$0xf0] %vm15_vm0, %v1221_v11  }
 0x196   :  { %1542 = vrot.lane.b32.xlu2 %v3116_v2, %s2108_s29 }
 0x197   :  { %v1158_v13 = vpop.permute.xlu1 %1157   ;;  %v1149_v14 = vpop.permute.xlu0 %1148  }
 0x198   :  { %1949 = vst.msk [vmem:[%s4104_s1 + $0x345] ss:$8 sm:$0xf] %vm15_vm0, %v1158_v13   ;;  %v1248_v15 = vpop.permute.xlu2 %1247  }
 0x199   :  { %1950 = vst.msk [vmem:[%s4104_s1 + $0x345] ss:$8 sm:$0xf0] %vm15_vm0, %v1158_v13  }
 0x19a   :  { %1947 = vst.msk [vmem:[%s4104_s1 + $0x305] ss:$8 sm:$0xf] %vm15_vm0, %v1149_v14  }
 0x19b   :  { %1948 = vst.msk [vmem:[%s4104_s1 + $0x305] ss:$8 sm:$0xf0] %vm15_vm0, %v1149_v14  }
 0x19c   :  { %1969 = vst.msk [vmem:[%s4104_s1 + $0x5c5] ss:$8 sm:$0xf] %vm15_vm0, %v1248_v15  }
 0x19d   :  { %1560 = vrot.lane.b32.xlu1 %v1559_v16, %s2108_s29  ;;  %1551 = vrot.lane.b32.xlu0 %v1550_v12, %s2108_s29  ;;  %1970 = vst.msk [vmem:[%s4104_s1 + $0x5c5] ss:$8 sm:$0xf0] %vm15_vm0, %v1248_v15  }
 0x19e   :  { %1569 = vrot.lane.b32.xlu2 %v3158_v6, %s2108_s29 }
 0x19f   :  { %v1185_v17 = vpop.permute.xlu1 %1184   ;;  %v1176_v18 = vpop.permute.xlu0 %1175  }
 0x1a0   :  { %1955 = vst.msk [vmem:[%s4104_s1 + $0x405] ss:$8 sm:$0xf] %vm15_vm0, %v1185_v17   ;;  %v1274_v19 = vpop.permute.xlu2 %1273  }
 0x1a1   :  { %1956 = vst.msk [vmem:[%s4104_s1 + $0x405] ss:$8 sm:$0xf0] %vm15_vm0, %v1185_v17  }
 0x1a2   :  { %1953 = vst.msk [vmem:[%s4104_s1 + $0x3c5] ss:$8 sm:$0xf] %vm15_vm0, %v1176_v18  }
 0x1a3   :  { %1954 = vst.msk [vmem:[%s4104_s1 + $0x3c5] ss:$8 sm:$0xf0] %vm15_vm0, %v1176_v18  }
 0x1a4   :  { %1975 = vst.msk [vmem:[%s4104_s1 + $0x86] ss:$8 sm:$0xf] %vm15_vm0, %v1274_v19  }
 0x1a5   :  { %1587 = vrot.lane.b32.xlu1 %v3226_v58, %s2108_s29  ;;  %1578 = vrot.lane.b32.xlu0 %v3196_v9, %s2108_s29  ;;  %1976 = vst.msk [vmem:[%s4104_s1 + $0x86] ss:$8 sm:$0xf0] %vm15_vm0, %v1274_v19  }
 0x1a6   :  { %1596 = vrot.lane.b32.xlu2 %v3236_v59, %s2108_s29 }
 0x1a7   :  { %v1212_v20 = vpop.permute.xlu1 %1211   ;;  %v1203_v21 = vpop.permute.xlu0 %1202  }
 0x1a8   :  { %1961 = vst.msk [vmem:[%s4104_s1 + $0x4c5] ss:$8 sm:$0xf] %vm15_vm0, %v1212_v20   ;;  %v1301_v22 = vpop.permute.xlu2 %1300  }
 0x1a9   :  { %1962 = vst.msk [vmem:[%s4104_s1 + $0x4c5] ss:$8 sm:$0xf0] %vm15_vm0, %v1212_v20  }
 0x1aa   :  { %1959 = vst.msk [vmem:[%s4104_s1 + $0x485] ss:$8 sm:$0xf] %vm15_vm0, %v1203_v21  }
 0x1ab   :  { %1960 = vst.msk [vmem:[%s4104_s1 + $0x485] ss:$8 sm:$0xf0] %vm15_vm0, %v1203_v21  }
 0x1ac   :  { %1981 = vst.msk [vmem:[%s4104_s1 + $0x146] ss:$8 sm:$0xf] %vm15_vm0, %v1301_v22  }
 0x1ad   :  { %1614 = vrot.lane.b32.xlu1 %v3272_v24, %s2108_s29  ;;  %1605 = vrot.lane.b32.xlu0 %v3274_v25, %s2108_s29  ;;  %1982 = vst.msk [vmem:[%s4104_s1 + $0x146] ss:$8 sm:$0xf0] %vm15_vm0, %v1301_v22  }
 0x1ae   :  { %1623 = vrot.lane.b32.xlu2 %v3284_v26, %s2108_s29 }
 0x1af   :  { %v1239_v49 = vpop.permute.xlu1 %1238   ;;  %v1230_v23 = vpop.permute.xlu0 %1229  }
 0x1b0   :  { %1967 = vst.msk [vmem:[%s4104_s1 + $0x585] ss:$8 sm:$0xf] %vm15_vm0, %v1239_v49   ;;  %v1328_v1 = vpop.permute.xlu2 %1327  }
 0x1b1   :  { %1968 = vst.msk [vmem:[%s4104_s1 + $0x585] ss:$8 sm:$0xf0] %vm15_vm0, %v1239_v49  }
 0x1b2   :  { %1965 = vst.msk [vmem:[%s4104_s1 + $0x545] ss:$8 sm:$0xf] %vm15_vm0, %v1230_v23  }
 0x1b3   :  { %1966 = vst.msk [vmem:[%s4104_s1 + $0x545] ss:$8 sm:$0xf0] %vm15_vm0, %v1230_v23  }
 0x1b4   :  { %1987 = vst.msk [vmem:[%s4104_s1 + $0x206] ss:$8 sm:$0xf] %vm15_vm0, %v1328_v1  }
 0x1b5   :  { %1641 = vrot.lane.b32.xlu1 %v3316_v31, %s2108_s29  ;;  %1632 = vrot.lane.b32.xlu0 %v3318_v32, %s2108_s29  ;;  %1988 = vst.msk [vmem:[%s4104_s1 + $0x206] ss:$8 sm:$0xf0] %vm15_vm0, %v1328_v1  }
 0x1b6   :  { %1650 = vrot.lane.b32.xlu2 %v3328_v33, %s2108_s29 }
 0x1b7   :  { %v1265_v4 = vpop.permute.xlu1 %1264   ;;  %v1256_v50 = vpop.permute.xlu0 %1255  }
 0x1b8   :  { %1973 = vst.msk [vmem:[%s4104_s1 + $0x46] ss:$8 sm:$0xf] %vm15_vm0, %v1265_v4   ;;  %v1355_v51 = vpop.permute.xlu2 %1354  }
 0x1b9   :  { %1974 = vst.msk [vmem:[%s4104_s1 + $0x46] ss:$8 sm:$0xf0] %vm15_vm0, %v1265_v4  }
 0x1ba   :  { %1971 = vst.msk [vmem:[%s4104_s1 + $0x6] ss:$8 sm:$0xf] %vm15_vm0, %v1256_v50  }
 0x1bb   :  { %1972 = vst.msk [vmem:[%s4104_s1 + $0x6] ss:$8 sm:$0xf0] %vm15_vm0, %v1256_v50  }
 0x1bc   :  { %1993 = vst.msk [vmem:[%s4104_s1 + $0x2c6] ss:$8 sm:$0xf] %vm15_vm0, %v1355_v51  }
 0x1bd   :  { %1668 = vrot.lane.b32.xlu1 %v3360_v38, %s2108_s29  ;;  %1659 = vrot.lane.b32.xlu0 %v3362_v39, %s2108_s29  ;;  %1994 = vst.msk [vmem:[%s4104_s1 + $0x2c6] ss:$8 sm:$0xf0] %vm15_vm0, %v1355_v51  }
 0x1be   :  { %1677 = vrot.lane.b32.xlu2 %v3372_v40, %s2108_s29 }
 0x1bf   :  { %v1292_v2 = vpop.permute.xlu1 %1291   ;;  %v1283_v3 = vpop.permute.xlu0 %1282  }
 0x1c0   :  { %1979 = vst.msk [vmem:[%s4104_s1 + $0x106] ss:$8 sm:$0xf] %vm15_vm0, %v1292_v2   ;;  %v1382_v52 = vpop.permute.xlu2 %1381  }
 0x1c1   :  { %1980 = vst.msk [vmem:[%s4104_s1 + $0x106] ss:$8 sm:$0xf0] %vm15_vm0, %v1292_v2  }
 0x1c2   :  { %1977 = vst.msk [vmem:[%s4104_s1 + $0xc6] ss:$8 sm:$0xf] %vm15_vm0, %v1283_v3  }
 0x1c3   :  { %1978 = vst.msk [vmem:[%s4104_s1 + $0xc6] ss:$8 sm:$0xf0] %vm15_vm0, %v1283_v3  }
 0x1c4   :  { %1999 = vst.msk [vmem:[%s4104_s1 + $0x386] ss:$8 sm:$0xf] %vm15_vm0, %v1382_v52  }
 0x1c5   :  { %2000 = vst.msk [vmem:[%s4104_s1 + $0x386] ss:$8 sm:$0xf0] %vm15_vm0, %v1382_v52  }
 0x1c7   :  { %v1319_v53 = vpop.permute.xlu1 %1318   ;;  %v1310_v6 = vpop.permute.xlu0 %1309  }
 0x1c8   :  { %1985 = vst.msk [vmem:[%s4104_s1 + $0x1c6] ss:$8 sm:$0xf] %vm15_vm0, %v1319_v53   ;;  %v1409_v7 = vpop.permute.xlu2 %1408  }
 0x1c9   :  { %1986 = vst.msk [vmem:[%s4104_s1 + $0x1c6] ss:$8 sm:$0xf0] %vm15_vm0, %v1319_v53  }
 0x1ca   :  { %1983 = vst.msk [vmem:[%s4104_s1 + $0x186] ss:$8 sm:$0xf] %vm15_vm0, %v1310_v6  }
 0x1cb   :  { %1984 = vst.msk [vmem:[%s4104_s1 + $0x186] ss:$8 sm:$0xf0] %vm15_vm0, %v1310_v6  }
 0x1cc   :  { %2005 = vst.msk [vmem:[%s4104_s1 + $0x446] ss:$8 sm:$0xf] %vm15_vm0, %v1409_v7  }
 0x1cd   :  { %2006 = vst.msk [vmem:[%s4104_s1 + $0x446] ss:$8 sm:$0xf0] %vm15_vm0, %v1409_v7  }
 0x1cf   :  { %v1346_v54 = vpop.permute.xlu1 %1345   ;;  %v1337_v55 = vpop.permute.xlu0 %1336  }
 0x1d0   :  { %1991 = vst.msk [vmem:[%s4104_s1 + $0x286] ss:$8 sm:$0xf] %vm15_vm0, %v1346_v54   ;;  %v1436_v9 = vpop.permute.xlu2 %1435  }
 0x1d1   :  { %1992 = vst.msk [vmem:[%s4104_s1 + $0x286] ss:$8 sm:$0xf0] %vm15_vm0, %v1346_v54  }
 0x1d2   :  { %1989 = vst.msk [vmem:[%s4104_s1 + $0x246] ss:$8 sm:$0xf] %vm15_vm0, %v1337_v55  }
 0x1d3   :  { %1990 = vst.msk [vmem:[%s4104_s1 + $0x246] ss:$8 sm:$0xf0] %vm15_vm0, %v1337_v55  }
 0x1d4   :  { %2011 = vst.msk [vmem:[%s4104_s1 + $0x506] ss:$8 sm:$0xf] %vm15_vm0, %v1436_v9  }
 0x1d5   :  { %2012 = vst.msk [vmem:[%s4104_s1 + $0x506] ss:$8 sm:$0xf0] %vm15_vm0, %v1436_v9  }
 0x1d7   :  { %v1373_v10 = vpop.permute.xlu1 %1372   ;;  %v1364_v56 = vpop.permute.xlu0 %1363  }
 0x1d8   :  { %1997 = vst.msk [vmem:[%s4104_s1 + $0x346] ss:$8 sm:$0xf] %vm15_vm0, %v1373_v10   ;;  %v1463_v57 = vpop.permute.xlu2 %1462  }
 0x1d9   :  { %1998 = vst.msk [vmem:[%s4104_s1 + $0x346] ss:$8 sm:$0xf0] %vm15_vm0, %v1373_v10  }
 0x1da   :  { %1995 = vst.msk [vmem:[%s4104_s1 + $0x306] ss:$8 sm:$0xf] %vm15_vm0, %v1364_v56  }
 0x1db   :  { %1996 = vst.msk [vmem:[%s4104_s1 + $0x306] ss:$8 sm:$0xf0] %vm15_vm0, %v1364_v56  }
 0x1dc   :  { %2017 = vst.msk [vmem:[%s4104_s1 + $0x5c6] ss:$8 sm:$0xf] %vm15_vm0, %v1463_v57  }
 0x1dd   :  { %2018 = vst.msk [vmem:[%s4104_s1 + $0x5c6] ss:$8 sm:$0xf0] %vm15_vm0, %v1463_v57  }
 0x1df   :  { %v1400_v58 = vpop.permute.xlu1 %1399   ;;  %v1391_v59 = vpop.permute.xlu0 %1390  }
 0x1e0   :  { %2003 = vst.msk [vmem:[%s4104_s1 + $0x406] ss:$8 sm:$0xf] %vm15_vm0, %v1400_v58   ;;  %v1489_v60 = vpop.permute.xlu2 %1488  }
 0x1e1   :  { %2004 = vst.msk [vmem:[%s4104_s1 + $0x406] ss:$8 sm:$0xf0] %vm15_vm0, %v1400_v58  }
 0x1e2   :  { %2001 = vst.msk [vmem:[%s4104_s1 + $0x3c6] ss:$8 sm:$0xf] %vm15_vm0, %v1391_v59  }
 0x1e3   :  { %2002 = vst.msk [vmem:[%s4104_s1 + $0x3c6] ss:$8 sm:$0xf0] %vm15_vm0, %v1391_v59  }
 0x1e4   :  { %2023 = vst.msk [vmem:[%s4104_s1 + $0x87] ss:$8 sm:$0xf] %vm15_vm0, %v1489_v60  }
 0x1e5   :  { %2024 = vst.msk [vmem:[%s4104_s1 + $0x87] ss:$8 sm:$0xf0] %vm15_vm0, %v1489_v60  }
 0x1e7   :  { %v1427_v61 = vpop.permute.xlu1 %1426   ;;  %v1418_v62 = vpop.permute.xlu0 %1417  }
 0x1e8   :  { %2009 = vst.msk [vmem:[%s4104_s1 + $0x4c6] ss:$8 sm:$0xf] %vm15_vm0, %v1427_v61   ;;  %v1516_v63 = vpop.permute.xlu2 %1515  }
 0x1e9   :  { %2010 = vst.msk [vmem:[%s4104_s1 + $0x4c6] ss:$8 sm:$0xf0] %vm15_vm0, %v1427_v61  }
 0x1ea   :  { %2007 = vst.msk [vmem:[%s4104_s1 + $0x486] ss:$8 sm:$0xf] %vm15_vm0, %v1418_v62  }
 0x1eb   :  { %2008 = vst.msk [vmem:[%s4104_s1 + $0x486] ss:$8 sm:$0xf0] %vm15_vm0, %v1418_v62  }
 0x1ec   :  { %2029 = vst.msk [vmem:[%s4104_s1 + $0x147] ss:$8 sm:$0xf] %vm15_vm0, %v1516_v63  }
 0x1ed   :  { %2030 = vst.msk [vmem:[%s4104_s1 + $0x147] ss:$8 sm:$0xf0] %vm15_vm0, %v1516_v63  }
 0x1ef   :  { %v1454_v24 = vpop.permute.xlu1 %1453   ;;  %v1445_v25 = vpop.permute.xlu0 %1444  }
 0x1f0   :  { %2015 = vst.msk [vmem:[%s4104_s1 + $0x586] ss:$8 sm:$0xf] %vm15_vm0, %v1454_v24   ;;  %v1543_v26 = vpop.permute.xlu2 %1542  }
 0x1f1   :  { %2016 = vst.msk [vmem:[%s4104_s1 + $0x586] ss:$8 sm:$0xf0] %vm15_vm0, %v1454_v24  }
 0x1f2   :  { %2013 = vst.msk [vmem:[%s4104_s1 + $0x546] ss:$8 sm:$0xf] %vm15_vm0, %v1445_v25  }
 0x1f3   :  { %2014 = vst.msk [vmem:[%s4104_s1 + $0x546] ss:$8 sm:$0xf0] %vm15_vm0, %v1445_v25  }
 0x1f4   :  { %2035 = vst.msk [vmem:[%s4104_s1 + $0x207] ss:$8 sm:$0xf] %vm15_vm0, %v1543_v26  }
 0x1f5   :  { %2036 = vst.msk [vmem:[%s4104_s1 + $0x207] ss:$8 sm:$0xf0] %vm15_vm0, %v1543_v26  }
 0x1f7   :  { %v1480_v27 = vpop.permute.xlu1 %1479   ;;  %v1471_v28 = vpop.permute.xlu0 %1470  }
 0x1f8   :  { %2021 = vst.msk [vmem:[%s4104_s1 + $0x47] ss:$8 sm:$0xf] %vm15_vm0, %v1480_v27   ;;  %v1570_v29 = vpop.permute.xlu2 %1569  }
 0x1f9   :  { %2022 = vst.msk [vmem:[%s4104_s1 + $0x47] ss:$8 sm:$0xf0] %vm15_vm0, %v1480_v27  }
 0x1fa   :  { %2019 = vst.msk [vmem:[%s4104_s1 + $0x7] ss:$8 sm:$0xf] %vm15_vm0, %v1471_v28  }
 0x1fb   :  { %2020 = vst.msk [vmem:[%s4104_s1 + $0x7] ss:$8 sm:$0xf0] %vm15_vm0, %v1471_v28  }
 0x1fc   :  { %2041 = vst.msk [vmem:[%s4104_s1 + $0x2c7] ss:$8 sm:$0xf] %vm15_vm0, %v1570_v29  }
 0x1fd   :  { %2042 = vst.msk [vmem:[%s4104_s1 + $0x2c7] ss:$8 sm:$0xf0] %vm15_vm0, %v1570_v29  }
 0x1ff   :  { %v1507_v30 = vpop.permute.xlu1 %1506   ;;  %v1498_v31 = vpop.permute.xlu0 %1497  }
 0x200   :  { %2027 = vst.msk [vmem:[%s4104_s1 + $0x107] ss:$8 sm:$0xf] %vm15_vm0, %v1507_v30   ;;  %v1597_v32 = vpop.permute.xlu2 %1596  }
 0x201   :  { %2028 = vst.msk [vmem:[%s4104_s1 + $0x107] ss:$8 sm:$0xf0] %vm15_vm0, %v1507_v30  }
 0x202   :  { %2025 = vst.msk [vmem:[%s4104_s1 + $0xc7] ss:$8 sm:$0xf] %vm15_vm0, %v1498_v31  }
 0x203   :  { %2026 = vst.msk [vmem:[%s4104_s1 + $0xc7] ss:$8 sm:$0xf0] %vm15_vm0, %v1498_v31  }
 0x204   :  { %2047 = vst.msk [vmem:[%s4104_s1 + $0x387] ss:$8 sm:$0xf] %vm15_vm0, %v1597_v32  }
 0x205   :  { %2048 = vst.msk [vmem:[%s4104_s1 + $0x387] ss:$8 sm:$0xf0] %vm15_vm0, %v1597_v32  }
 0x207   :  { %v1534_v33 = vpop.permute.xlu1 %1533   ;;  %v1525_v34 = vpop.permute.xlu0 %1524  }
 0x208   :  { %2033 = vst.msk [vmem:[%s4104_s1 + $0x1c7] ss:$8 sm:$0xf] %vm15_vm0, %v1534_v33   ;;  %v1624_v35 = vpop.permute.xlu2 %1623  }
 0x209   :  { %2034 = vst.msk [vmem:[%s4104_s1 + $0x1c7] ss:$8 sm:$0xf0] %vm15_vm0, %v1534_v33  }
 0x20a   :  { %2031 = vst.msk [vmem:[%s4104_s1 + $0x187] ss:$8 sm:$0xf] %vm15_vm0, %v1525_v34  }
 0x20b   :  { %2032 = vst.msk [vmem:[%s4104_s1 + $0x187] ss:$8 sm:$0xf0] %vm15_vm0, %v1525_v34  }
 0x20c   :  { %2053 = vst.msk [vmem:[%s4104_s1 + $0x447] ss:$8 sm:$0xf] %vm15_vm0, %v1624_v35  }
 0x20d   :  { %2054 = vst.msk [vmem:[%s4104_s1 + $0x447] ss:$8 sm:$0xf0] %vm15_vm0, %v1624_v35  }
 0x20f   :  { %v1561_v36 = vpop.permute.xlu1 %1560   ;;  %v1552_v37 = vpop.permute.xlu0 %1551  }
 0x210   :  { %2039 = vst.msk [vmem:[%s4104_s1 + $0x287] ss:$8 sm:$0xf] %vm15_vm0, %v1561_v36   ;;  %v1651_v38 = vpop.permute.xlu2 %1650  }
 0x211   :  { %2040 = vst.msk [vmem:[%s4104_s1 + $0x287] ss:$8 sm:$0xf0] %vm15_vm0, %v1561_v36  }
 0x212   :  { %2037 = vst.msk [vmem:[%s4104_s1 + $0x247] ss:$8 sm:$0xf] %vm15_vm0, %v1552_v37  }
 0x213   :  { %2038 = vst.msk [vmem:[%s4104_s1 + $0x247] ss:$8 sm:$0xf0] %vm15_vm0, %v1552_v37  }
 0x214   :  { %2059 = vst.msk [vmem:[%s4104_s1 + $0x507] ss:$8 sm:$0xf] %vm15_vm0, %v1651_v38  }
 0x215   :  { %2060 = vst.msk [vmem:[%s4104_s1 + $0x507] ss:$8 sm:$0xf0] %vm15_vm0, %v1651_v38  }
 0x217   :  { %v1588_v39 = vpop.permute.xlu1 %1587   ;;  %v1579_v40 = vpop.permute.xlu0 %1578  }
 0x218   :  { %2045 = vst.msk [vmem:[%s4104_s1 + $0x347] ss:$8 sm:$0xf] %vm15_vm0, %v1588_v39   ;;  %v1678_v41 = vpop.permute.xlu2 %1677  }
 0x219   :  { %2046 = vst.msk [vmem:[%s4104_s1 + $0x347] ss:$8 sm:$0xf0] %vm15_vm0, %v1588_v39  }
 0x21a   :  { %2043 = vst.msk [vmem:[%s4104_s1 + $0x307] ss:$8 sm:$0xf] %vm15_vm0, %v1579_v40  }
 0x21b   :  { %2044 = vst.msk [vmem:[%s4104_s1 + $0x307] ss:$8 sm:$0xf0] %vm15_vm0, %v1579_v40  }
 0x21c   :  { %2065 = vst.msk [vmem:[%s4104_s1 + $0x5c7] ss:$8 sm:$0xf] %vm15_vm0, %v1678_v41  }
 0x21d   :  { %2066 = vst.msk [vmem:[%s4104_s1 + $0x5c7] ss:$8 sm:$0xf0] %vm15_vm0, %v1678_v41  }
 0x21f   :  { %v1615_v42 = vpop.permute.xlu1 %1614   ;;  %v1606_v0 = vpop.permute.xlu0 %1605  }
 0x220   :  { %2051 = vst.msk [vmem:[%s4104_s1 + $0x407] ss:$8 sm:$0xf] %vm15_vm0, %v1615_v42  }
 0x221   :  { %2052 = vst.msk [vmem:[%s4104_s1 + $0x407] ss:$8 sm:$0xf0] %vm15_vm0, %v1615_v42  }
 0x222   :  { %2049 = vst.msk [vmem:[%s4104_s1 + $0x3c7] ss:$8 sm:$0xf] %vm15_vm0, %v1606_v0  }
 0x223   :  { %2050 = vst.msk [vmem:[%s4104_s1 + $0x3c7] ss:$8 sm:$0xf0] %vm15_vm0, %v1606_v0  }
 0x227   :  { %v1642_v43 = vpop.permute.xlu1 %1641   ;;  %v1633_v44 = vpop.permute.xlu0 %1632  }
 0x228   :  { %2057 = vst.msk [vmem:[%s4104_s1 + $0x4c7] ss:$8 sm:$0xf] %vm15_vm0, %v1642_v43  }
 0x229   :  { %2058 = vst.msk [vmem:[%s4104_s1 + $0x4c7] ss:$8 sm:$0xf0] %vm15_vm0, %v1642_v43  }
 0x22a   :  { %2055 = vst.msk [vmem:[%s4104_s1 + $0x487] ss:$8 sm:$0xf] %vm15_vm0, %v1633_v44  }
 0x22b   :  { %2056 = vst.msk [vmem:[%s4104_s1 + $0x487] ss:$8 sm:$0xf0] %vm15_vm0, %v1633_v44  }
 0x22f   :  { %v1669_v5 = vpop.permute.xlu1 %1668   ;;  %v1660_v45 = vpop.permute.xlu0 %1659  }
 0x230   :  { %2063 = vst.msk [vmem:[%s4104_s1 + $0x587] ss:$8 sm:$0xf] %vm15_vm0, %v1669_v5  }
 0x231   :  { %2064 = vst.msk [vmem:[%s4104_s1 + $0x587] ss:$8 sm:$0xf0] %vm15_vm0, %v1669_v5  }
 0x232   :  { %2061 = vst.msk [vmem:[%s4104_s1 + $0x547] ss:$8 sm:$0xf] %vm15_vm0, %v1660_v45  }
 0x233   :  { %2062 = vst.msk [vmem:[%s4104_s1 + $0x547] ss:$8 sm:$0xf0] %vm15_vm0, %v1660_v45  }
 0x234   :  { %1684 = vsyncpa [#allocation1], 1 }

// kernel: _actor_fwd.1
= control target key start
LH: loop header
LB: loop body
LE: loop exit
PB: predicated region body
PF: predicated region fallthrough
CT: control target
= control target key end

     0   :  { %9 = vsyncpa [#allocation3], 0  ;;  %s2154_s0 = inlined_call_operand.vmem [shape: f32[2,64,48], index: 0, kind: input, shape index: {}]   ;;  %s2155_s1 = inlined_call_operand.vmem [shape: f32[2,1,2], index: 1, kind: input, shape index: {}]   ;;  %s2156_s2 = inlined_call_operand.vmem [shape: f32[352,64], index: 2, kind: input, shape index: {}]   ;;  %s2157_s3 = inlined_call_operand.vmem [shape: f32[304,256], index: 3, kind: input, shape index: {}]   ;;  %s2158_s4 = inlined_call_operand.hbm [shape: f32[2,1,2], index: 4, kind: output, shape index: {}]  }
   0x1   :  { %11 = vsyncpa [#allocation3 + $0x1], 0  ;;  %s1604_s15 = smov 0   ;;  %s1606_s16 = smov 0  }
   0x2   :  { %s1608_s17 = smov 0   ;;  %s1610_s18 = smov 0  }
   0x3 LB: > { %s1625_s19 = sadd.s32 4294967295, %s1577_s18   ;;  %s1378_s20 = sadd.s32 4294967294, %s1577_s18   ;;  %s1577_s18 = sphi %s1610_s18, %s2164_s18   ;;  %s1573_s17 = sphi %s1608_s17, %s2163_s17   ;;  %s1569_s16 = sphi %s1606_s16, %s2162_s16   ;;  %s1565_s15 = sphi %s1604_s15, %s2161_s15  }
   0x4   : > { %s1629_s21 = sadd.s32 1, %s1577_s18   ;;  %s118_s22 = sadd.s32 1, %s1573_s17 }
   0x5   : > { %s115_s23 = ssub.s32 %s1577_s18, %s1629_s21  ;;  %p128_p0 = scmp.ne.s32.totalorder %s1573_s17, %s1569_s16 }
   0x6   : > { %p116_p1 = scmp.eq.s32.totalorder %s115_s23, 0  ;;  %p129_p2 = scmp.eq.s32.totalorder %s1625_s19, 1 }
   0x7   : > { %p134_p3 = scmp.ne.s32.totalorder %s1569_s16, %s1565_s15  ;;  %p135_p4 = scmp.eq.s32.totalorder %s1378_s20, 1 }
   0x8   : > { %s1640_s24 = scalar_select %p116_p1, %s1573_s17, %s118_s22  }
   0x9   : > { %p1642_p5 = por %p129_p2, %p128_p0  ;;  %p1646_p6 = por %p135_p4, %p134_p3 }
   0xa   : > { %p1381_p7 = scmp.ge.s32.totalorder %s1577_s18, 1  ;;  %p173_p8 = scmp.lt.s32.totalorder %s1577_s18, 3 }
   0xc   : > { %p174_p9 = pnand %p1381_p7, %p173_p8 }
   0xd   : > { %p201_p10 = scmp.lt.s32.totalorder (!%p174_p9), %s1625_s19, 1  ;;  %s1310_s9 = scalar_lea.hbm (!%p174_p9), %s2158_s4, %s1625_s19 }
   0xe   : > { %177 = sbr.rel (%p174_p9) target bundleno = 1214 (0x4be), region = 36  ;;  %s1314_s12 = sshll.u32 (!%p174_p9), %s1310_s9, 4  ;;  %s1315_s12 = int_to_ptr.hbm [resolvable:$true] %s1314_s12 }
   0xf   : > { %s1529_s14 = sshra.s32 (!%p174_p9), %s1315_s12, 4  ;;  %s1535_s23 = scalar_lea.hbm (!%p174_p9), %s2158_s4, 2  ;;  %s1530_s14 = int_to_ptr.hbm [resolvable:$true] %s1529_s14 }
  0x10   : > { %p1536_p0 = scmp.lt.s32.totalorder (!%p174_p9), %s1530_s14, %s2158_s4 }
  0x13   : > { %v214_v0 = vld [vmem:[%s2156_s2 + $0xb8] sm:$0xff]  ;;  %v213_v1 = vld [vmem:[%s2156_s2 + $0xb0] sm:$0xff]  ;;  %v212_v2 = vld [vmem:[%s2156_s2 + $0xa8] sm:$0xff]  ;;  %s1663_s7 = scalar_select %p201_p10, %s1625_s19, 1  ;;  %vm225_vm0 = vcmask 392192   ;;  %vm317_vm1 = vcmask 523264  }
  0x14   : > { %260 = vmatpush.msra.mxu0 %v214_v0  ;;  %v211_v3 = vld [vmem:[%s2156_s2 + $0xa0] sm:$0xff]  ;;  %v210_v4 = vld [vmem:[%s2156_s2 + $0x98] sm:$0xff]  ;;  %v209_v5 = vld [vmem:[%s2156_s2 + $0x90] sm:$0xff]  ;;  %vm452_vm2 = vcmask 130048   ;;  %vm773_vm3 = vcmask 261120   ;;  %vm1275_vm4 = vcmask 8192  }
  0x15   : > { %s1449_s10 = sshll.u32 %s1663_s7, 6  ;;  %v1505_v21 = vld [vmem:[%s2156_s2 + $0xc0] ss:$0 sm:$0xff]  ;;  %v300_v40 = vld [vmem:[%s2156_s2 + $0x8] sm:$0xff]  ;;  %v301_v41 = vld [vmem:[%s2156_s2 + $0x10] sm:$0xff]  ;;  %s208_s5 = scalar_lea.vmem %s2155_s1, %s1663_s7 }
  0x16   : > { %261 = vmatpush.msra.mxu0 %v213_v1  ;;  %s205_s20 = scalar_lea.vmem %s2154_s0, %s1449_s10  ;;  %v299_v39 = vld [vmem:[%s2156_s2] sm:$0xff]  ;;  %v302_v42 = vld [vmem:[%s2156_s2 + $0x18] sm:$0xff]  ;;  %v304_v44 = vld [vmem:[%s2156_s2 + $0x28] sm:$0xff]  ;;  %s199_s7 = sand.u32 1, %s1569_s16  }
  0x17   : > { %v216_v6 = vld [vmem:[%s205_s20] sm:$0xff]  ;;  %v217_v7 = vld [vmem:[%s205_s20 + $0x8] sm:$0xff]  ;;  %v218_v8 = vld [vmem:[%s205_s20 + $0x10] sm:$0xff]  ;;  %s200_s10 = scalar_lea.vmem [#allocation2], %s199_s7  ;;  %s1302_s13 = scalar_lea.sflag [#allocation3], %s199_s7 }
  0x18   : > { %262 = vmatpush.msra.mxu0 %v212_v2  ;;  %v219_v9 = vld [vmem:[%s205_s20 + $0x18] sm:$0xff]  ;;  %v220_v10 = vld [vmem:[%s205_s20 + $0x20] sm:$0xff]  ;;  %v221_v11 = vld [vmem:[%s205_s20 + $0x28] sm:$0xff]  ;;  %s1312_s11 = sshll.u32 %s200_s10, 4  ;;  %s1531_s19 = scalar_lea.hbm %s1530_s14, 1  ;;  %s1313_s11 = int_to_ptr.vmem [resolvable:$true] %s1312_s11 }
  0x19   : > { %v222_v12 = vld [vmem:[%s205_s20 + $0x30] sm:$0xff]  ;;  %v223_v13 = vld [vmem:[%s205_s20 + $0x38] sm:$0xff]  ;;  %v303_v43 = vld [vmem:[%s2156_s2 + $0x20] sm:$0xff]  ;;  %p1532_p11 = scmp.ne.s32.totalorder %s1530_s14, %s1531_s19  ;;  %p1537_p1 = scmp.lt.s32.totalorder %s1535_s23, %s1531_s19 }
  0x1a   : > { %263 = vmatpush.msra.mxu0 %v211_v3  ;;  %v305_v45 = vld [vmem:[%s2156_s2 + $0x30] sm:$0xff]  ;;  %v306_v46 = vld [vmem:[%s2156_s2 + $0x38] sm:$0xff]  ;;  %v307_v47 = vld [vmem:[%s2156_s2 + $0x40] sm:$0xff] }
  0x1b   : > { %v308_v48 = vld [vmem:[%s2156_s2 + $0x48] sm:$0xff]  ;;  %v309_v49 = vld [vmem:[%s2156_s2 + $0x50] sm:$0xff]  ;;  %v310_v50 = vld [vmem:[%s2156_s2 + $0x58] sm:$0xff]  ;;  %p1533_p12 = pnand %p1532_p11, %p1642_p5  ;;  %p1538_p2 = por %p1537_p1, %p1536_p0 }
  0x1c   : > { %264 = vmatpush.msra.mxu0 %v210_v4  ;;  %v316_v51 = vld [vmem:[%s2156_s2 + $0x88] sm:$0xff]  ;;  %v311_v52 = vld [vmem:[%s2156_s2 + $0x60] sm:$0xff]  ;;  %v445_v53 = vld [vmem:[%s2156_s2 + $0xd0] sm:$0xff] }
  0x1d   : > { %v444_v54 = vld [vmem:[%s2156_s2 + $0xc8] sm:$0xff]  ;;  %v313_v56 = vld [vmem:[%s2156_s2 + $0x70] sm:$0xff]  ;;  %v447_v57 = vld [vmem:[%s2156_s2 + $0xe0] sm:$0xff]  ;;  %p1534_p13 = pneg %p1533_p12 }
  0x1e   : > { %265 = vmatpush.msra.mxu0 %v209_v5  ;;  %v312_v55 = vld [vmem:[%s2156_s2 + $0x68] sm:$0xff]  ;;  %v446_v58 = vld [vmem:[%s2156_s2 + $0xd8] sm:$0xff]  ;;  %v315_v60 = vld [vmem:[%s2156_s2 + $0x80] sm:$0xff] }
  0x1f   : > { %1384 = vmatmul.msk.f32.vlgmr.msra.gmra.mxu0 %vm225_vm0, %v216_v6  ;;  %v314_v59 = vld [vmem:[%s2156_s2 + $0x78] sm:$0xff]  ;;  %v449_v61 = vld [vmem:[%s2156_s2 + $0xf0] sm:$0xff]  ;;  %v448_v0 = vld [vmem:[%s2156_s2 + $0xe8] sm:$0xff]  ;;  %p1539_p3 = pnand %p1538_p2, %p1534_p13 }
  0x20   : > { %v451_v1 = vld [vmem:[%s2156_s2 + $0x100] sm:$0xff]  ;;  %v450_v2 = vld [vmem:[%s2156_s2 + $0xf8] sm:$0xff]  ;;  %v512_v5 = vld [vmem:[%s2156_s2 + $0x110] sm:$0xff] }
  0x21   : > { %473 = vmatpush.msra.mxu2 %v451_v1  ;;  %v511_v6 = vld [vmem:[%s2156_s2 + $0x108] sm:$0xff]  ;;  %v739_v1 = vld [vmem:[%s2157_s3] sm:$0xff] }
  0x23   : > { %474 = vmatpush.msra.mxu2 %v450_v2  ;;  %v740_v2 = vld [vmem:[%s2157_s3 + $0x8] sm:$0xff] }
  0x25   : > { %533 = vmatpush.msrb.mxu2 %v512_v5 }
  0x27   : > { %1385 = vmatmul.msk.f32.gmra.mxu0 %vm225_vm0, %v217_v7  ;;  %534 = vmatpush.msrb.mxu2 %v511_v6 }
  0x2f   : > { %1386 = vmatmul.msk.f32.gmra.mxu0 %vm225_vm0, %v218_v8 }
  0x37   : > { %1387 = vmatmul.msk.f32.gmra.mxu0 %vm225_vm0, %v219_v9  ;;  %v572_v9 = vld [vmem:[%s2156_s2 + $0x120] sm:$0xff] }
  0x3f   : > { %1388 = vmatmul.msk.f32.gmra.mxu0 %vm225_vm0, %v220_v10 }
  0x47   : > { %1389 = vmatmul.msk.f32.gmra.mxu0 %vm225_vm0, %v221_v11  ;;  %v571_v11 = vld [vmem:[%s2156_s2 + $0x118] sm:$0xff] }
  0x4f   : > { %1390 = vmatmul.msk.f32.gmra.mxu0 %vm225_vm0, %v222_v12 }
  0x57   : > { %1391 = vmatmul.msk.f32.gmra.mxu0 %vm225_vm0, %v223_v13  ;;  %v632_v13 = vld [vmem:[%s2156_s2 + $0x130] sm:$0xff] }
  0x9c   : > { %v267_v14 = vpop.f32.mrf.mxu0 }
  0x9d   : > { %v268_v35 = vadd.f32 %v1505_v21, %v267_v14 }
  0x9f   : > { %v291_v38 = vmax.f32 %v268_v35, 0.0 }
  0xa4   : > { %v270_v15 = vpop.f32.mrf.mxu0 }
  0xa5   : > { %v271_v33 = vadd.f32 %v1505_v21, %v270_v15  ;;  %v631_v15 = vld [vmem:[%s2156_s2 + $0x128] sm:$0xff] }
  0xa7   : > { %v292_v37 = vmax.f32 %v271_v33, 0.0 }
  0xac   : > { %v273_v16 = vpop.f32.mrf.mxu0 }
  0xad   : > { %v274_v31 = vadd.f32 %v1505_v21, %v273_v16 }
  0xaf   : > { %v293_v36 = vmax.f32 %v274_v31, 0.0 }
  0xb4   : > { %v276_v17 = vpop.f32.mrf.mxu0 }
  0xb5   : > { %v277_v29 = vadd.f32 %v1505_v21, %v276_v17  ;;  %v665_v17 = vld [vmem:[%s2156_s2 + $0x140] sm:$0xff] }
  0xb7   : > { %v294_v34 = vmax.f32 %v277_v29, 0.0 }
  0xbc   : > { %v279_v18 = vpop.f32.mrf.mxu0 }
  0xbd   : > { %v280_v27 = vadd.f32 %v1505_v21, %v279_v18  ;;  %v664_v18 = vld [vmem:[%s2156_s2 + $0x138] sm:$0xff] }
  0xbf   : > { %v295_v32 = vmax.f32 %v280_v27, 0.0 }
  0xc4   : > { %v282_v19 = vpop.f32.mrf.mxu0 }
  0xc5   : > { %v283_v25 = vadd.f32 %v1505_v21, %v282_v19 }
  0xc7   : > { %v296_v30 = vmax.f32 %v283_v25, 0.0 }
  0xcc   : > { %v285_v20 = vpop.f32.mrf.mxu0 }
  0xcd   : > { %v286_v23 = vadd.f32 %v1505_v21, %v285_v20  ;;  %v698_v20 = vld [vmem:[%s2156_s2 + $0x150] sm:$0xff] }
  0xcf   : > { %v297_v28 = vmax.f32 %v286_v23, 0.0 }
  0xd4   : > { %v288_v22 = vpop.f32.mrf.mxu0 }
  0xd5   : > { %v289_v24 = vadd.f32 %v1505_v21, %v288_v22  ;;  %v697_v22 = vld [vmem:[%s2156_s2 + $0x148] sm:$0xff] }
  0xd7   : > { %v298_v26 = vmax.f32 %v289_v24, 0.0 }
  0xd9   : > { %380 = vmatpush.msrb.mxu0 %v298_v26  ;;  %1450 = vmatpush.msra.mxu1 %v298_v26 }
  0xda   : > { %1451 = vmatpush.msra.mxu3 %v298_v26 }
  0xdb   : > { %381 = vmatpush.msrb.mxu0 %v297_v28  ;;  %1452 = vmatpush.msra.mxu1 %v297_v28 }
  0xdc   : > { %1453 = vmatpush.msra.mxu3 %v297_v28 }
  0xdd   : > { %382 = vmatpush.msrb.mxu0 %v296_v30  ;;  %1454 = vmatpush.msra.mxu1 %v296_v30 }
  0xde   : > { %1455 = vmatpush.msra.mxu3 %v296_v30 }
  0xdf   : > { %383 = vmatpush.msrb.mxu0 %v295_v32  ;;  %1456 = vmatpush.msra.mxu1 %v295_v32 }
  0xe0   : > { %1457 = vmatpush.msra.mxu3 %v295_v32 }
  0xe1   : > { %384 = vmatpush.msrb.mxu0 %v294_v34  ;;  %1458 = vmatpush.msra.mxu1 %v294_v34 }
  0xe2   : > { %1459 = vmatpush.msra.mxu3 %v294_v34 }
  0xe3   : > { %385 = vmatpush.msrb.mxu0 %v293_v36  ;;  %1460 = vmatpush.msra.mxu1 %v293_v36 }
  0xe4   : > { %1461 = vmatpush.msra.mxu3 %v293_v36 }
  0xe5   : > { %386 = vmatpush.msrb.mxu0 %v292_v37  ;;  %1462 = vmatpush.msra.mxu1 %v292_v37 }
  0xe6   : > { %1463 = vmatpush.msra.mxu3 %v292_v37 }
  0xe7   : > { %387 = vmatpush.msrb.mxu0 %v291_v38  ;;  %1464 = vmatpush.msra.mxu1 %v291_v38 }
  0xe8   : > { %1465 = vmatpush.msra.mxu3 %v291_v38  ;;  %1392 = vmatmul.msk.f32.vlgmr.msrb.gmra.mxu0 %vm317_vm1, %v299_v39  ;;  %v769_v39 = vld [vmem:[%s2157_s3 + $0xf0] sm:$0xff] }
  0xe9   : > { %1393 = vmatmul.msk.f32.vlgmr.msra.gmra.mxu1 %vm317_vm1, %v300_v40  ;;  %1409 = vmatmul.msk.f32.vlgmr.msra.gmra.mxu3 %vm317_vm1, %v316_v51  ;;  %v767_v40 = vld [vmem:[%s2157_s3 + $0xe0] sm:$0xff]  ;;  %v860_v51 = vld [vmem:[%s2157_s3 + $0x110] sm:$0xff] }
  0xea   : > { %502 = vmatpush.msrb.mxu3 %v445_v53  ;;  %v858_v53 = vld [vmem:[%s2157_s3 + $0x100] sm:$0xff] }
  0xec   : > { %503 = vmatpush.msrb.mxu3 %v444_v54  ;;  %v745_v54 = vld [vmem:[%s2157_s3 + $0x30] sm:$0xff] }
  0xee   : > { %562 = vmatpush.msra.mxu3 %v447_v57  ;;  %v754_v57 = vld [vmem:[%s2157_s3 + $0x78] sm:$0xff] }
  0xf0   : > { %563 = vmatpush.msra.mxu3 %v446_v58  ;;  %v743_v58 = vld [vmem:[%s2157_s3 + $0x20] sm:$0xff] }
  0xf1   : > { %1394 = vmatmul.msk.f32.gmra.mxu1 %vm317_vm1, %v301_v41 }
  0xf9   : > { %1395 = vmatmul.msk.f32.gmra.mxu1 %vm317_vm1, %v302_v42 }
 0x101   : > { %1396 = vmatmul.msk.f32.gmra.mxu1 %vm317_vm1, %v303_v43  ;;  %v770_v43 = vld [vmem:[%s2157_s3 + $0xf8] sm:$0xff] }
 0x102   : > { %808 = vmatpush.msra.mxu0 %v770_v43  ;;  %v1051_v43 = vld [vmem:[%s2157_s3 + $0x1a8] sm:$0xff] }
 0x109   : > { %1397 = vmatmul.msk.f32.gmra.mxu1 %vm317_vm1, %v304_v44  ;;  %v864_v44 = vld [vmem:[%s2157_s3 + $0x130] sm:$0xff] }
 0x111   : > { %1398 = vmatmul.msk.f32.gmra.mxu1 %vm317_vm1, %v305_v45  ;;  %v768_v45 = vld [vmem:[%s2157_s3 + $0xe8] sm:$0xff] }
 0x112   : > { %809 = vmatpush.msra.mxu0 %v768_v45  ;;  %v955_v45 = vld [vmem:[%s2157_s3 + $0x158] sm:$0xff] }
 0x119   : > { %1399 = vmatmul.msk.f32.gmra.mxu1 %vm317_vm1, %v306_v46  ;;  %v862_v46 = vld [vmem:[%s2157_s3 + $0x120] sm:$0xff] }
 0x121   : > { %1400 = vmatmul.msk.f32.gmra.mxu1 %vm317_vm1, %v307_v47  ;;  %v765_v47 = vld [vmem:[%s2157_s3 + $0xd0] sm:$0xff] }
 0x129   : > { %1401 = vmatmul.msk.f32.gmra.mxu1 %vm317_vm1, %v308_v48  ;;  %v763_v48 = vld [vmem:[%s2157_s3 + $0xc0] sm:$0xff] }
 0x131   : > { %1402 = vmatmul.msk.f32.gmra.mxu1 %vm317_vm1, %v309_v49  ;;  %v766_v49 = vld [vmem:[%s2157_s3 + $0xd8] sm:$0xff] }
 0x132   : > { %810 = vmatpush.msra.mxu0 %v766_v49  ;;  %v953_v49 = vld [vmem:[%s2157_s3 + $0x148] sm:$0xff] }
 0x139   : > { %1403 = vmatmul.msk.f32.gmra.mxu1 %vm317_vm1, %v310_v50 }
 0x141   : > { %1404 = vmatmul.msk.f32.gmra.mxu1 %vm317_vm1, %v311_v52  ;;  %v764_v52 = vld [vmem:[%s2157_s3 + $0xc8] sm:$0xff] }
 0x142   : > { %811 = vmatpush.msra.mxu0 %v764_v52 }
 0x149   : > { %1405 = vmatmul.msk.f32.gmra.mxu1 %vm317_vm1, %v312_v55 }
 0x151   : > { %1406 = vmatmul.msk.f32.gmra.mxu1 %vm317_vm1, %v313_v56  ;;  %v746_v56 = vld [vmem:[%s2157_s3 + $0x38] sm:$0xff] }
 0x152   : > { %850 = vmatpush.msrb.mxu0 %v746_v56  ;;  %v1158_v56 = vld [vmem:[%s2157_s3 + $0x230] sm:$0xff] }
 0x159   : > { %1407 = vmatmul.msk.f32.gmra.mxu1 %vm317_vm1, %v314_v59  ;;  %v744_v59 = vld [vmem:[%s2157_s3 + $0x28] sm:$0xff] }
 0x15a   : > { %851 = vmatpush.msrb.mxu0 %v744_v59 }
 0x161   : > { %1408 = vmatmul.msk.f32.gmra.mxu1 %vm317_vm1, %v315_v60  ;;  %v752_v60 = vld [vmem:[%s2157_s3 + $0x68] sm:$0xff] }
 0x165   : > { %v389_v62 = vpop.f32.mrf.mxu0 }
 0x166   : > { %v392_v63 = vpop.f32.mrf.mxu1  ;;  %1412 = vmatmul.msk.f32.vlgmr.msrb.gmra.mxu3 %vm452_vm2, %v389_v62  ;;  %v742_v62 = vld [vmem:[%s2157_s3 + $0x18] sm:$0xff] }
 0x167   : > { %622 = vmatpush.msrb.mxu3 %v449_v61  ;;  %v741_v61 = vld [vmem:[%s2157_s3 + $0x10] sm:$0xff]  ;;  %852 = vmatpush.msrb.mxu0 %v742_v62  ;;  %v756_v62 = vld [vmem:[%s2157_s3 + $0x88] sm:$0xff] }
 0x169   : > { %623 = vmatpush.msrb.mxu3 %v448_v0  ;;  %853 = vmatpush.msrb.mxu0 %v740_v2  ;;  %v1046_v2 = vld [vmem:[%s2157_s3 + $0x180] sm:$0xff] }
 0x16c   : > { %v440_v28 = vpop.f32.mrf.mxu3 }
 0x16e   : > { %v395_v3 = vpop.f32.mrf.mxu1  ;;  %1413 = vmatmul.msk.f32.gmra.mxu3 %vm452_vm2, %v392_v63  ;;  %v750_v63 = vld [vmem:[%s2157_s3 + $0x58] sm:$0xff] }
 0x176   : > { %v398_v4 = vpop.f32.mrf.mxu1  ;;  %1416 = vmatmul.msk.f32.vlgmr.msra.gmra.mxu3 %vm452_vm2, %v395_v3  ;;  %v748_v3 = vld [vmem:[%s2157_s3 + $0x48] sm:$0xff] }
 0x177   : > { %686 = vmatpush.msra.mxu3 %v665_v17 }
 0x179   : > { %687 = vmatpush.msra.mxu3 %v664_v18  ;;  %v1926_v18 = vld [vmem:[%s2156_s2 + $0x158] ss:$0 sm:$0xff] }
 0x17e   : > { %v401_v7 = vpop.f32.mrf.mxu1  ;;  %1417 = vmatmul.msk.f32.gmra.mxu3 %vm452_vm2, %v398_v4 }
 0x186   : > { %v404_v8 = vpop.f32.mrf.mxu1  ;;  %1420 = vmatmul.msk.f32.vlgmr.msrb.gmra.mxu3 %vm452_vm2, %v401_v7 }
 0x187   : > { %788 = vmatpush.msrb.mxu3 %v769_v39  ;;  %v1053_v39 = vld [vmem:[%s2157_s3 + $0x1b8] sm:$0xff] }
 0x189   : > { %789 = vmatpush.msrb.mxu3 %v767_v40  ;;  %v956_v40 = vld [vmem:[%s2157_s3 + $0x160] sm:$0xff] }
 0x18b   : > { %790 = vmatpush.msrb.mxu3 %v765_v47  ;;  %v952_v47 = vld [vmem:[%s2157_s3 + $0x140] sm:$0xff] }
 0x18d   : > { %791 = vmatpush.msrb.mxu3 %v763_v48 }
 0x18e   : > { %v407_v10 = vpop.f32.mrf.mxu1  ;;  %1421 = vmatmul.msk.f32.gmra.mxu3 %vm452_vm2, %v404_v8 }
 0x18f   : > { %1410 = vmatmul.msk.f32.vlgmr.msra.gmra.mxu2 %vm452_vm2, %v407_v10 }
 0x190   : > { %593 = vmatpush.msra.mxu2 %v572_v9 }
 0x192   : > { %594 = vmatpush.msra.mxu2 %v571_v11 }
 0x196   : > { %v410_v12 = vpop.f32.mrf.mxu1 }
 0x197   : > { %1411 = vmatmul.msk.f32.gmra.mxu2 %vm452_vm2, %v410_v12 }
 0x19e   : > { %v413_v14 = vpop.f32.mrf.mxu1 }
 0x19f   : > { %1414 = vmatmul.msk.f32.vlgmr.msrb.gmra.mxu2 %vm452_vm2, %v413_v14 }
 0x1a0   : > { %653 = vmatpush.msrb.mxu2 %v632_v13 }
 0x1a2   : > { %654 = vmatpush.msrb.mxu2 %v631_v15 }
 0x1a6   : > { %v416_v16 = vpop.f32.mrf.mxu1 }
 0x1a7   : > { %1415 = vmatmul.msk.f32.gmra.mxu2 %vm452_vm2, %v416_v16 }
 0x1ae   : > { %v419_v19 = vpop.f32.mrf.mxu1 }
 0x1af   : > { %1418 = vmatmul.msk.f32.vlgmr.msra.gmra.mxu2 %vm452_vm2, %v419_v19 }
 0x1b0   : > { %719 = vmatpush.msra.mxu2 %v698_v20 }
 0x1b2   : > { %720 = vmatpush.msra.mxu2 %v697_v22 }
 0x1b6   : > { %v422_v21 = vpop.f32.mrf.mxu1 }
 0x1b7   : > { %1419 = vmatmul.msk.f32.gmra.mxu2 %vm452_vm2, %v422_v21 }
 0x1be   : > { %v425_v23 = vpop.f32.mrf.mxu1 }
 0x1bf   : > { %1422 = vmatmul.msk.f32.vlgmr.msrb.gmra.mxu2 %vm452_vm2, %v425_v23 }
 0x1c0   : > { %881 = vmatpush.msrb.mxu2 %v864_v44  ;;  %v954_v44 = vld [vmem:[%s2157_s3 + $0x150] sm:$0xff] }
 0x1c2   : > { %882 = vmatpush.msrb.mxu2 %v862_v46  ;;  %v1049_v46 = vld [vmem:[%s2157_s3 + $0x198] sm:$0xff] }
 0x1c4   : > { %883 = vmatpush.msrb.mxu2 %v860_v51  ;;  %v1047_v51 = vld [vmem:[%s2157_s3 + $0x188] sm:$0xff] }
 0x1c6   : > { %v428_v24 = vpop.f32.mrf.mxu1  ;;  %884 = vmatpush.msrb.mxu2 %v858_v53  ;;  %v762_v53 = vld [vmem:[%s2157_s3 + $0xb8] sm:$0xff] }
 0x1c7   : > { %1423 = vmatmul.msk.f32.gmra.mxu2 %vm452_vm2, %v428_v24  ;;  %v865_v24 = vld [vmem:[%s2157_s3 + $0x138] sm:$0xff] }
 0x1ce   : > { %v431_v25 = vpop.f32.mrf.mxu1 }
 0x1cf   : > { %1424 = vmatmul.msk.f32.vlgmr.msra.gmra.mxu3 %vm452_vm2, %v431_v25  ;;  %v753_v25 = vld [vmem:[%s2157_s3 + $0x70] sm:$0xff] }
 0x1d0   : > { %830 = vmatpush.msra.mxu3 %v745_v54  ;;  %v1052_v54 = vld [vmem:[%s2157_s3 + $0x1b0] sm:$0xff] }
 0x1d2   : > { %831 = vmatpush.msra.mxu3 %v743_v58  ;;  %v1050_v58 = vld [vmem:[%s2157_s3 + $0x1a0] sm:$0xff] }
 0x1d4   : > { %832 = vmatpush.msra.mxu3 %v741_v61 }
 0x1d6   : > { %v434_v26 = vpop.f32.mrf.mxu1  ;;  %833 = vmatpush.msra.mxu3 %v739_v1  ;;  %v1154_v1 = vld [vmem:[%s2157_s3 + $0x210] sm:$0xff] }
 0x1d7   : > { %1425 = vmatmul.msk.f32.gmra.mxu3 %vm452_vm2, %v434_v26  ;;  %v761_v26 = vld [vmem:[%s2157_s3 + $0xb0] sm:$0xff] }
 0x1de   : > { %v437_v27 = vpop.f32.mrf.mxu1 }
 0x1df   : > { %1426 = vmatmul.msk.f32.vlgmr.msra.gmra.mxu2 %vm452_vm2, %v437_v27  ;;  %v863_v27 = vld [vmem:[%s2157_s3 + $0x128] sm:$0xff] }
 0x1e0   : > { %944 = vmatpush.msra.mxu2 %v754_v57  ;;  %v760_v57 = vld [vmem:[%s2157_s3 + $0xa8] sm:$0xff] }
 0x1e2   : > { %945 = vmatpush.msra.mxu2 %v752_v60  ;;  %v1048_v60 = vld [vmem:[%s2157_s3 + $0x190] sm:$0xff] }
 0x1e4   : > { %946 = vmatpush.msra.mxu2 %v750_v63 }
 0x1e6   : > { %947 = vmatpush.msra.mxu2 %v748_v3  ;;  %v1105_v3 = vld [vmem:[%s2157_s3 + $0x1f0] sm:$0xff] }
 0x1e7   : > { %1427 = vmatmul.msk.f32.gmra.mxu2 %vm452_vm2, %v440_v28  ;;  %v751_v28 = vld [vmem:[%s2157_s3 + $0x60] sm:$0xff] }
 0x1e9   : > { %v1833_v29 = vpop.f32.mrf.mxu3 }
 0x1f1   : > { %v508_v31 = vpop.f32.mrf.mxu3 }
 0x1f9   : > { %v565_v35 = vpop.f32.mrf.mxu3 }
 0x201   : > { %v568_v37 = vpop.f32.mrf.mxu3 }
 0x209   : > { %v625_v41 = vpop.f32.mrf.mxu3 }
 0x211   : > { %v1870_v50 = vpop.f32.mrf.mxu3 }
 0x212   : > { %v1835_v30 = vpop.f32.mrf.mxu2 }
 0x213   : > { %v506_v11 = vadd.f32 %v1833_v29, %v1835_v30  ;;  %v759_v29 = vld [vmem:[%s2157_s3 + $0xa0] sm:$0xff]  ;;  %v861_v30 = vld [vmem:[%s2157_s3 + $0x118] sm:$0xff] }
 0x21a   : > { %v479_v32 = vpop.f32.mrf.mxu2 }
 0x21b   : > { %v509_v33 = vadd.f32 %v508_v31, %v479_v32  ;;  %v749_v31 = vld [vmem:[%s2157_s3 + $0x50] sm:$0xff] }
 0x21c   : > { %v757_v32 = vld [vmem:[%s2157_s3 + $0x90] sm:$0xff] }
 0x222   : > { %v1837_v34 = vpop.f32.mrf.mxu2 }
 0x223   : > { %v566_v9 = vadd.f32 %v565_v35, %v1837_v34  ;;  %v747_v34 = vld [vmem:[%s2157_s3 + $0x40] sm:$0xff] }
 0x22a   : > { %v539_v36 = vpop.f32.mrf.mxu2 }
 0x22b   : > { %v569_v5 = vadd.f32 %v568_v37, %v539_v36  ;;  %v755_v36 = vld [vmem:[%s2157_s3 + $0x80] sm:$0xff]  ;;  %v958_v37 = vld [vmem:[%s2157_s3 + $0x170] sm:$0xff] }
 0x232   : > { %v1839_v38 = vpop.f32.mrf.mxu2 }
 0x233   : > { %v626_v13 = vadd.f32 %v625_v41, %v1839_v38  ;;  %v959_v38 = vld [vmem:[%s2157_s3 + $0x178] sm:$0xff]  ;;  %v957_v41 = vld [vmem:[%s2157_s3 + $0x168] sm:$0xff] }
 0x23a   : > { %v1847_v42 = vpop.f32.mrf.mxu2 }
 0x242   : > { %v656_v55 = vpop.f32.mrf.mxu2 }
 0x243   : > { %v662_v14 = vadd.f32 %v656_v55, %v506_v11  ;;  %v629_v55 = vadd.f32 %v1870_v50, %v1847_v42  ;;  %v1156_v42 = vld [vmem:[%s2157_s3 + $0x220] sm:$0xff]  ;;  %v758_v50 = vld [vmem:[%s2157_s3 + $0x98] sm:$0xff] }
 0x244   : > { %v1099_v11 = vld [vmem:[%s2157_s3 + $0x1c0] sm:$0xff] }
 0x24a   : > { %v659_v4 = vpop.f32.mrf.mxu2 }
 0x24b   : > { %v663_v7 = vadd.f32 %v659_v4, %v509_v33  ;;  %v859_v33 = vld [vmem:[%s2157_s3 + $0x108] sm:$0xff]  ;;  %v1106_v4 = vld [vmem:[%s2157_s3 + $0x1f8] sm:$0xff] }
 0x252   : > { %v689_v0 = vpop.f32.mrf.mxu3 }
 0x253   : > { %v695_v12 = vadd.f32 %v689_v0, %v566_v9  ;;  %v1101_v9 = vld [vmem:[%s2157_s3 + $0x1d0] sm:$0xff] }
 0x255   : > { %v730_v16 = vadd.f32 %v695_v12, %v662_v14  ;;  %v1159_v14 = vld [vmem:[%s2157_s3 + $0x238] sm:$0xff] }
 0x25a   : > { %v692_v6 = vpop.f32.mrf.mxu3 }
 0x25b   : > { %v696_v8 = vadd.f32 %v692_v6, %v569_v5  ;;  %v1152_v5 = vld [vmem:[%s2157_s3 + $0x200] sm:$0xff] }
 0x25c   : > { %v1103_v6 = vld [vmem:[%s2157_s3 + $0x1e0] sm:$0xff] }
 0x25d   : > { %v1918_v10 = vadd.f32 %v696_v8, %v663_v7  ;;  %v1104_v7 = vld [vmem:[%s2157_s3 + $0x1e8] sm:$0xff] }
 0x262   : > { %v722_v15 = vpop.f32.mrf.mxu2 }
 0x263   : > { %v728_v17 = vadd.f32 %v722_v15, %v626_v13  ;;  %v1100_v13 = vld [vmem:[%s2157_s3 + $0x1c8] sm:$0xff] }
 0x264   : > { %v1157_v15 = vld [vmem:[%s2157_s3 + $0x228] sm:$0xff] }
 0x265   : > { %v732_v19 = vadd.f32 %v730_v16, %v728_v17  ;;  %v1155_v16 = vld [vmem:[%s2157_s3 + $0x218] sm:$0xff] }
 0x267   : > { %v735_v20 = vadd.f32 %v1926_v18, %v732_v19 }
 0x269   : > { %v1929_v21 = vmax.f32 %v735_v20, 0.0 }
 0x26a   : > { %v725_v52 = vpop.f32.mrf.mxu2 }
 0x26b   : > { %v772_v22 = vrot.slane %v1929_v21, 3  ;;  %v866_v23 = vrot.slane %v1929_v21, 4  ;;  %v909_v35 = vrot.slane %v1929_v21, 1  ;;  %v1003_v48 = vrot.slane %v1929_v21, 2 }
 0x26c   : > { %v729_v59 = vadd.f32 %v725_v52, %v629_v55  ;;  %v960_v61 = vrot.slane %v1929_v21, 5  ;;  %v1054_v0 = vrot.slane %v1929_v21, 6  ;;  %v1107_v17 = vrot.slane %v1929_v21, 7 }
 0x26d   : > { %1428 = vmatmul.msk.f32.vlgmr.msrb.gmra.mxu3 %vm773_vm3, %v772_v22  ;;  %1429 = vmatmul.msk.f32.vlgmr.msra.gmra.mxu0 %vm773_vm3, %v772_v22 }
 0x26e   : > { %1432 = vmatmul.msk.f32.vlgmr.msrb.gmra.mxu2 %vm773_vm3, %v866_v23  ;;  %901 = vmatpush.msrb.mxu3 %v865_v24  ;;  %v733_v63 = vadd.f32 %v1918_v10, %v729_v59  ;;  %v1102_v10 = vld [vmem:[%s2157_s3 + $0x1d8] sm:$0xff] }
 0x26f   : > { %924 = vmatpush.msra.mxu0 %v753_v25  ;;  %1018 = vmatpush.msrb.mxu2 %v761_v26 }
 0x270   : > { %902 = vmatpush.msrb.mxu3 %v863_v27  ;;  %v736_v8 = vadd.f32 %v1926_v18, %v733_v63  ;;  %v1153_v18 = vld [vmem:[%s2157_s3 + $0x208] sm:$0xff]  ;;  %v1220_v27 = vld [vmem:[%s2157_s3 + $0x250] sm:$0xff] }
 0x271   : > { %925 = vmatpush.msra.mxu0 %v751_v28  ;;  %1019 = vmatpush.msrb.mxu2 %v759_v29 }
 0x272   : > { %903 = vmatpush.msrb.mxu3 %v861_v30  ;;  %v738_v12 = vmax.f32 %v736_v8, 0.0  ;;  %v1221_v30 = vld [vmem:[%s2157_s3 + $0x258] sm:$0xff] }
 0x273   : > { %926 = vmatpush.msra.mxu0 %v749_v31  ;;  %1020 = vmatpush.msrb.mxu2 %v757_v32 }
 0x274   : > { %904 = vmatpush.msrb.mxu3 %v859_v33 }
 0x275   : > { %1430 = vmatmul.msk.f32.vlgmr.msra.gmra.mxu3 %vm773_vm3, %v1929_v21  ;;  %1431 = vmatmul.msk.f32.vlgmr.msrb.gmra.mxu0 %vm773_vm3, %v1929_v21 }
 0x276   : > { %1435 = vmatmul.msk.f32.vlgmr.msra.gmra.mxu2 %vm773_vm3, %v909_v35  ;;  %927 = vmatpush.msra.mxu0 %v747_v34 }
 0x277   : > { %1021 = vmatpush.msrb.mxu2 %v755_v36  ;;  %975 = vmatpush.msra.mxu3 %v958_v37 }
 0x278   : > { %995 = vmatpush.msrb.mxu0 %v959_v38 }
 0x279   : > { %1089 = vmatpush.msra.mxu2 %v1053_v39  ;;  %976 = vmatpush.msra.mxu3 %v956_v40  ;;  %v1446_v39 = vld [vmem:[%s2157_s3 + $0x240] ss:$8 sm:$0x3] }
 0x27a   : > { %996 = vmatpush.msrb.mxu0 %v957_v41 }
 0x27b   : > { %1090 = vmatpush.msra.mxu2 %v1051_v43  ;;  %977 = vmatpush.msra.mxu3 %v954_v44 }
 0x27c   : > { %997 = vmatpush.msrb.mxu0 %v955_v45 }
 0x27d   : > { %1091 = vmatpush.msra.mxu2 %v1049_v46  ;;  %1433 = vmatmul.msk.f32.vlgmr.msrb.gmra.mxu3 %vm773_vm3, %v866_v23 }
 0x27e   : > { %1434 = vmatmul.msk.f32.vlgmr.msra.gmra.mxu0 %vm773_vm3, %v909_v35  ;;  %1438 = vmatmul.msk.f32.vlgmr.msrb.gmra.mxu2 %vm773_vm3, %v1003_v48 }
 0x27f   : > { %978 = vmatpush.msra.mxu3 %v952_v47  ;;  %998 = vmatpush.msrb.mxu0 %v953_v49 }
 0x280   : > { %1092 = vmatpush.msra.mxu2 %v1047_v51 }
 0x281   : > { %1038 = vmatpush.msrb.mxu3 %v762_v53  ;;  %1069 = vmatpush.msra.mxu0 %v1052_v54 }
 0x282   : > { %1175 = vmatpush.msrb.mxu2 %v1158_v56 }
 0x283   : > { %1039 = vmatpush.msrb.mxu3 %v760_v57  ;;  %1070 = vmatpush.msra.mxu0 %v1050_v58 }
 0x284   : > { %1176 = vmatpush.msrb.mxu2 %v1156_v42  ;;  %v1213_v42 = vperm.slane %v1446_v39, 1 }
 0x285   : > { %1040 = vmatpush.msrb.mxu3 %v758_v50  ;;  %1071 = vmatpush.msra.mxu0 %v1048_v60 }
 0x286   : > { %1436 = vmatmul.msk.f32.vlgmr.msra.gmra.mxu3 %vm773_vm3, %v960_v61  ;;  %1437 = vmatmul.msk.f32.vlgmr.msrb.gmra.mxu0 %vm773_vm3, %v960_v61 }
 0x287   : > { %1441 = vmatmul.msk.f32.vlgmr.msra.gmra.mxu2 %vm773_vm3, %v1054_v0  ;;  %1041 = vmatpush.msrb.mxu3 %v756_v62  ;;  %v1265_v62 = vld [vmem:[%s208_s5] sm:$0x1] }
 0x288   : > { %1177 = vmatpush.msrb.mxu2 %v1154_v1  ;;  %1072 = vmatpush.msra.mxu0 %v1046_v2  ;;  %v1266_v63 = vadd.f32 1e-20, %v1265_v62 }
 0x289   : > { %1122 = vmatpush.msra.mxu3 %v1105_v3 }
 0x28a   : > { %1142 = vmatpush.msrb.mxu0 %v1106_v4  ;;  %1178 = vmatpush.msrb.mxu2 %v1152_v5  ;;  %1507 = vlog2.f32 %v1266_v63  ;;  %v1223_v5 = vrot.slane %v1220_v27, 2 }
 0x28b   : > { %1123 = vmatpush.msra.mxu3 %v1103_v6 }
 0x28c   : > { %1143 = vmatpush.msrb.mxu0 %v1104_v7  ;;  %1260 = vmatpush.xpose.msra.mxu2 %v1221_v30 }
 0x28d   : > { %1124 = vmatpush.msra.mxu3 %v1101_v9 }
 0x28e   : > { %1144 = vmatpush.msrb.mxu0 %v1102_v10  ;;  %1439 = vmatmul.msk.f32.vlgmr.msrb.gmra.mxu3 %vm773_vm3, %v1003_v48  ;;  %v1212_v48 = vperm.slane %v1446_v39, 0 }
 0x28f   : > { %1440 = vmatmul.msk.f32.vlgmr.msra.gmra.mxu0 %vm773_vm3, %v1054_v0  ;;  %1444 = vmatmul.msk.f32.vlgmr.msrb.gmra.mxu2 %vm773_vm3, %v738_v12 }
 0x290   : > { %1125 = vmatpush.msra.mxu3 %v1099_v11  ;;  %1145 = vmatpush.msrb.mxu0 %v1100_v13  ;;  %v1508_v0 = vpop.eup %1507 }
 0x291   : > { %v1268_v1 = vmul.f32 0.6931472, %v1508_v0 }
 0x292   : > { %1195 = vmatpush.msrb.mxu3 %v1159_v14  ;;  %1240 = vmatpush.xpose.msra.mxu0 %v1220_v27 }
 0x293   : > { %v1269_v2 = vsub.f32 0.0, %v1268_v1 }
 0x294   : > { %1196 = vmatpush.msrb.mxu3 %v1157_v15 }
 0x295   : > { %v1270_v3 = vadd.f32 1e-20, %v1269_v2 }
 0x296   : > { %1197 = vmatpush.msrb.mxu3 %v1155_v16 }
 0x297   : > { %1442 = vmatmul.msk.f32.vlgmr.msra.gmra.mxu3 %vm773_vm3, %v1107_v17  ;;  %1443 = vmatmul.msk.f32.vlgmr.msrb.gmra.mxu0 %vm773_vm3, %v1107_v17  ;;  %1509 = vlog2.f32 %v1270_v3 }
 0x298   : > { %1198 = vmatpush.msrb.mxu3 %v1153_v18 }
 0x29d   : > { %v1510_v4 = vpop.eup %1509 }
 0x29e   : > { %v1272_v6 = vmul.f32 0.6931472, %v1510_v4 }
 0x29f   : > { %1445 = vmatmul.msk.f32.vlgmr.msrb.gmra.mxu3 %vm773_vm3, %v738_v12 }
 0x2a0   : > { %v1273_v9 = vsub.f32 0.0, %v1272_v6 }
 0x2ea   : > { %v813_v19 = vpop.f32.mrf.mxu0 }
 0x2f0   : > { %v793_v20 = vpop.f32.mrf.mxu3 }
 0x2f1   : > { %v886_v22 = vpop.f32.mrf.mxu2 }
 0x2f2   : > { %v855_v23 = vpop.f32.mrf.mxu0 }
 0x2f3   : > { %v856_v49 = vadd.f32 %v855_v23, %v813_v19 }
 0x2f8   : > { %v835_v24 = vpop.f32.mrf.mxu3 }
 0x2f9   : > { %v949_v25 = vpop.f32.mrf.mxu2  ;;  %v836_v35 = vadd.f32 %v835_v24, %v793_v20 }
 0x2fb   : > { %v929_v26 = vpop.f32.mrf.mxu0 }
 0x2fc   : > { %v930_v36 = vadd.f32 %v929_v26, %v886_v22 }
 0x300   : > { %v906_v21 = vpop.f32.mrf.mxu3 }
 0x301   : > { %v1023_v28 = vpop.f32.mrf.mxu2  ;;  %v950_v45 = vadd.f32 %v949_v25, %v906_v21 }
 0x303   : > { %v1000_v29 = vpop.f32.mrf.mxu0 }
 0x309   : > { %v980_v31 = vpop.f32.mrf.mxu3 }
 0x30a   : > { %v1094_v32 = vpop.f32.mrf.mxu2  ;;  %v1024_v40 = vadd.f32 %v1023_v28, %v980_v31 }
 0x30b   : > { %v1098_v53 = vadd.f32 %v1094_v32, %v856_v49 }
 0x30c   : > { %v1074_v33 = vpop.f32.mrf.mxu0 }
 0x30d   : > { %v1097_v41 = vadd.f32 %v1074_v33, %v836_v35 }
 0x311   : > { %v1043_v34 = vpop.f32.mrf.mxu3 }
 0x312   : > { %v1180_v37 = vpop.f32.mrf.mxu2  ;;  %v1044_v54 = vadd.f32 %v1043_v34, %v1000_v29 }
 0x313   : > { %v1203_v46 = vadd.f32 %v1180_v37, %v1024_v40 }
 0x314   : > { %v1147_v44 = vpop.f32.mrf.mxu0 }
 0x315   : > { %v1151_v51 = vadd.f32 %v1147_v44, %v950_v45 }
 0x317   : > { %v1208_v57 = vadd.f32 %v1151_v51, %v1098_v53 }
 0x31a   : > { %v1127_v38 = vpop.f32.mrf.mxu3 }
 0x31b   : > { %v1150_v43 = vadd.f32 %v1127_v38, %v930_v36 }
 0x31d   : > { %v1207_v47 = vadd.f32 %v1150_v43, %v1097_v41 }
 0x31f   : > { %v1209_v52 = vadd.f32 %v1207_v47, %v1203_v46 }
 0x321   : > { %v1216_v55 = vadd.f32 %v1212_v48, %v1209_v52 }
 0x322   : > { %v1200_v56 = vpop.f32.mrf.mxu3 }
 0x323   : > { %v1218_v58 = vmax.f32 %v1216_v55, 0.0  ;;  %v1204_v59 = vadd.f32 %v1200_v56, %v1044_v54 }
 0x325   : > { %v1210_v50 = vadd.f32 %v1208_v57, %v1204_v59  ;;  %1241 = vmatmul.f32.vlgmr.msra.gmra.mxu0 %v1218_v58 }
 0x327   : > { %v1217_v60 = vadd.f32 %v1213_v42, %v1210_v50 }
 0x329   : > { %v1219_v61 = vmax.f32 %v1217_v60, 0.0 }
 0x32b   : > { %1261 = vmatmul.f32.vlgmr.msra.gmra.mxu2 %v1219_v61 }
 0x3a2   : > { %v1242_v7 = vpop.f32.mrf.mxu0 }
 0x3a3   : > { %v1243_v8 = vadd.f32 %v1242_v7, %v1223_v5 }
 0x3ae   : > { %v1262_v10 = vpop.f32.mrf.mxu2 }
 0x3af   : > { %v1263_v11 = vadd.f32 %v1262_v10, %v1243_v8 }
 0x3b1   : > { %v1274_v12 = vadd.f32 %v1273_v9, %v1263_v11 }
 0x3b3   : > { %v1276_v13 = vsel %vm1275_vm4, %v1274_v12, -inf }
 0x3b4   : > { %1277 = vmax.xlane.f32.xlu0 %v1276_v13 }
 0x427   : > { %v1278_v14 = vpop.xlane.xlu0 %1277 }
 0x428   : > { %v1279_v15 = vsub.f32 %v1274_v12, %v1278_v14 }
 0x42a   : > { %v1280_v16 = vmul.f32 1.442695, %v1279_v15 }
 0x42c   : > { %1511 = vpow2.f32 %v1280_v16 }
 0x432   : > { %v1512_v17 = vpop.eup %1511 }
 0x433   : > { %v1282_v18 = vsel %vm1275_vm4, %v1512_v17, 0.0 }
 0x434   : > { %1283 = vadd.xlane.f32.xlu0 %v1282_v18 }
 0x4a7   : > { %v1284_v19 = vpop.xlane.xlu0 %1283 }
 0x4a8   : > { %1513 = vrcp.f32 %v1284_v19  ;;  %v1296_v24 = vand.u32 2147483648, %v1284_v19  ;;  %v1294_v26 = vand.u32 2147483647, %v1284_v19  ;;  %vm1290_vm6 = vweird.f32 %v1284_v19 }
 0x4aa   : > { %v1297_v27 = vor.u32 1.1754944e-38, %v1296_v24  ;;  %vm1295_vm8 = vcmp.eq.f32.partialorder %v1294_v26, 8.507059e+37 }
 0x4ae   : > { %v1514_v20 = vpop.eup %1513 }
 0x4af   : > { %v1286_v22 = vmul.f32 %v1514_v20, %v1284_v19  ;;  %vm1291_vm5 = vweird.f32 %v1514_v20 }
 0x4b0   : > { %vm1292_vm7 = vmor %vm1290_vm6, %vm1291_vm5 }
 0x4b1   : > { %v1287_v23 = vsub.f32 1.0, %v1286_v22 }
 0x4b3   : > { %v1288_v25 = vmul.f32 %v1514_v20, %v1287_v23 }
 0x4b5   : > { %v1289_v21 = vadd.f32 %v1514_v20, %v1288_v25 }
 0x4b7   : > { %v1293_v28 = vsel %vm1292_vm7, %v1514_v20, %v1289_v21 }
 0x4b8   : > { %v1298_v29 = vsel %vm1295_vm8, %v1297_v27, %v1293_v28 }
 0x4b9   : > { %v1299_v30 = vmul.f32 %v1512_v17, %v1298_v29 }
 0x4bb   : > { %1300 = vst.msk [vmem:[%s200_s10] sm:$0x1] %vm1275_vm4, %v1299_v30 }
 0x4bc   : > { %1542 = shalt.err (!%p1539_p3)
}
 0x4bd   : > { %1466 = dma.vmem_to_hbm [thread:$0]  (%p1642_p5), %s1313_s11, 16, %s1315_s12, %s1302_s13  }
 0x4be PF: > { %p1472_p4 = scmp.ge.s32.totalorder %s1577_s18, 2  ;;  %s1326_s29 = sand.u32 1, %s1565_s15  }
 0x4bf   : > { %s1327_s30 = scalar_lea.sflag [#allocation3], %s1326_s29 }
 0x4c0   : > { %p1469_p7 = pnand %p1472_p4, %p1646_p6 }
 0x4c2   : > { %p1470_p8 = pneg %p1469_p7 }
 0x4c4   : > { %1560 = dma.done.wait (%p1470_p8), %s1327_s30, 16  }
 0x4c5   : > { %1562 = vsyncadd (%p1470_p8), %s1327_s30, 4294967280  ;;  %p14_p9 = scmp.ge.s32.totalorder %s1629_s21, 4   ;;  %s2161_s15 = smov %s1569_s16 }
 0x4c6   : > { %s2162_s16 = smov %s1573_s17  ;;  %s2163_s17 = smov %s1640_s24 }
 0x4c7   : > { %s2164_s18 = smov %s1629_s21  ;;  %16 = sbr.rel (!%p14_p9) target bundleno = 3 (0x3), region = 75 }
 0x4cc   :  { %1332 = vsyncpa [#allocation3], 1 }
 0x4cd   :  { %1334 = vsyncpa [#allocation3 + $0x1], 1 }

</bundles_post_ra>
